<compile_context>
chip_gen: v6e
topology: v6e:2x2x1
jax: 0.10.0
libtpu: 0.0.40
codegen_flags: <defaults>
</compile_context>

<pallas_src>
import functools
import math

import jax
import jax.numpy as jnp
from jax.experimental import pallas as pl
from jax.experimental.pallas import tpu as pltpu


# row indices inside the packed per-layer vector slab (padded to 8 sublanes)
_LN1_W, _LN1_B, _BO, _LN2_W, _LN2_B, _B1, _B2 = range(7)
_VEC_ROWS = 8


# ---------------------------------------------------------------------------
# Kernel
# ---------------------------------------------------------------------------

def _layernorm(x, w, b, eps=1e-5):
    mean = jnp.mean(x, axis=-1, keepdims=True)
    var = jnp.mean((x - mean) ** 2, axis=-1, keepdims=True)
    return (x - mean) * jax.lax.rsqrt(var + eps) * w + b


def transformer_kernel(x_ref, wqkv_ref, wo_ref, vecs_ref, w1_ref, w2_ref,
                       o_ref, *, heads, dim_head, dim, mlp_hidden):
    """One (batch-tile, layer) step per grid point; activation resident in o_ref."""
    layer = pl.program_id(1)

    # Initialise the resident activation from the input on the first layer.
    @pl.when(layer == 0)
    def _():
        o_ref[...] = x_ref[...]

    inner = heads * dim_head

    x = o_ref[0]                       # (N, D) f32, resident in VMEM across depth
    vecs = vecs_ref[0]                 # (8, max_dim) packed per-layer vectors

    ln1_w = vecs[_LN1_W:_LN1_W + 1, :dim]
    ln1_b = vecs[_LN1_B:_LN1_B + 1, :dim]
    bo    = vecs[_BO:_BO + 1, :dim]
    ln2_w = vecs[_LN2_W:_LN2_W + 1, :dim]
    ln2_b = vecs[_LN2_B:_LN2_B + 1, :dim]
    b1    = vecs[_B1:_B1 + 1, :mlp_hidden]
    b2    = vecs[_B2:_B2 + 1, :dim]

    # ---------------- attention sub-block:  x += Wo @ Attn(LN(x)) + bo -----
    xn = _layernorm(x, ln1_w, ln1_b)

    # fused Q/K/V projection for all heads (attention scale already folded
    # into the Q columns at stacking time)
    qkv = jnp.dot(xn, wqkv_ref[0],
                  preferred_element_type=jnp.float32)          # (N, 3*inner)

    hv_heads = []
    for h in range(heads):             # heads is small & static (unrolled)
        q_h = qkv[:, h * dim_head:(h + 1) * dim_head]                      # (N, dh)
        k_h = qkv[:, inner + h * dim_head: inner + (h + 1) * dim_head]     # (N, dh)
        v_h = qkv[:, 2 * inner + h * dim_head: 2 * inner + (h + 1) * dim_head]

        # q @ k^T without an explicit transpose
        dots = jax.lax.dot_general(q_h, k_h, (((1,), (1,)), ((), ())),
                                   preferred_element_type=jnp.float32)     # (N, N)
        dots = dots - jnp.max(dots, axis=-1, keepdims=True)
        e = jnp.exp(dots)
        p = e * pl.reciprocal(jnp.sum(e, axis=-1, keepdims=True), approx=True)
        hv_heads.append(jnp.dot(p, v_h,
                                preferred_element_type=jnp.float32))       # (N, dh)

    hv = jnp.concatenate(hv_heads, axis=-1)                                # (N, inner)
    # fused output projection (single K=inner matmul) + bias + residual
    attn_out = jnp.dot(hv, wo_ref[0], preferred_element_type=jnp.float32) + bo
    x = x + attn_out

    # ---------------- feed-forward sub-block: x += W2 GELU(W1 LN(x)+b1)+b2 --
    xn2 = _layernorm(x, ln2_w, ln2_b)
    h1 = jnp.dot(xn2, w1_ref[0], preferred_element_type=jnp.float32) + b1  # (N, H)
    # exact (erf-based) GELU, matching torch.nn.GELU() default
    h1 = 0.5 * h1 * (1.0 + jax.lax.erf(h1 * (1.0 / math.sqrt(2.0))))
    ff = jnp.dot(h1, w2_ref[0], preferred_element_type=jnp.float32) + b2   # (N, D)

    o_ref[0] = x + ff                  # residual; stays resident for layer l+1


# ---------------------------------------------------------------------------
# Wrapper (pallas_call plumbing)
# ---------------------------------------------------------------------------

def transformer_forward(x, stacked, *, depth, heads, dim_head, mlp_hidden):
    """Mirror of Transformer.forward (dropout=0, stochastic_depth=0, coords=None)."""
    B, N, D = x.shape
    kernel = functools.partial(transformer_kernel, heads=heads, dim_head=dim_head,
                               dim=D, mlp_hidden=mlp_hidden)

    def layer_spec(shape):
        # select the current layer's slab of a depth-stacked (depth, ., .) array
        return pl.BlockSpec((1,) + tuple(shape[1:]), lambda b, l: (l, 0, 0))

    return pl.pallas_call(
        kernel,
        out_shape=jax.ShapeDtypeStruct((B, N, D), x.dtype),
        grid=(B, depth),
        in_specs=[
            pl.BlockSpec((1, N, D), lambda b, l: (b, 0, 0)),    # x (per batch tile)
            layer_spec(stacked["wqkv"].shape),
            layer_spec(stacked["wo"].shape),
            layer_spec(stacked["vecs"].shape),
            layer_spec(stacked["w1"].shape),
            layer_spec(stacked["w2"].shape),
        ],
        # same block index for every layer -> activation stays resident in VMEM
        out_specs=pl.BlockSpec((1, N, D), lambda b, l: (b, 0, 0)),
        compiler_params=pltpu.CompilerParams(
            # batch tiles are independent (2 TCs on v7x); depth carries a
            # dependency through the resident output block.
            dimension_semantics=("parallel", "arbitrary"),
            vmem_limit_bytes=48 * 1024 * 1024),
    )(x, stacked["wqkv"], stacked["wo"], stacked["vecs"],
      stacked["w1"], stacked["w2"])


# ---------------------------------------------------------------------------
# Parameter construction (canonical, torch-like layout)
# ---------------------------------------------------------------------------

def _xavier_normal(key, fan_in, fan_out):
    std = math.sqrt(2.0 / (fan_in + fan_out))
    return std * jax.random.normal(key, (fan_in, fan_out), jnp.float32)


def make_params(key, *, dim, depth, heads, dim_head, mlp_hidden):
    inner = heads * dim_head
    params = []
    for _ in range(depth):
        key, k_qkv, k_out, k_w1, k_w2 = jax.random.split(key, 5)
        params.append({
            "ln1_w": jnp.ones((dim,), jnp.float32),
            "ln1_b": jnp.zeros((dim,), jnp.float32),
            # to_qkv: Linear(dim, 3*inner, bias=False), xavier_normal init
            "wqkv": _xavier_normal(k_qkv, dim, 3 * inner),
            # to_out: Linear(inner, dim), bias=0 per init_weights
            "wo": _xavier_normal(k_out, inner, dim),
            "bo": jnp.zeros((dim,), jnp.float32),
            "ln2_w": jnp.ones((dim,), jnp.float32),
            "ln2_b": jnp.zeros((dim,), jnp.float32),
            # FeedForward: Linear(dim, hidden), GELU, Linear(hidden, dim)
            "w1": _xavier_normal(k_w1, dim, mlp_hidden),
            "b1": jnp.zeros((mlp_hidden,), jnp.float32),
            "w2": _xavier_normal(k_w2, mlp_hidden, dim),
            "b2": jnp.zeros((dim,), jnp.float32),
        })
    return params


def stack_params_for_kernel(params, *, heads, dim_head, dim, mlp_hidden):
    """Depth-stack weights; fold the attention scale into the Q columns of wqkv;
    coalesce the seven small per-layer vectors into one (depth, 8, max_dim) slab."""
    scale = dim_head ** -0.5
    inner = heads * dim_head
    max_dim = max(dim, mlp_hidden)

    def pad_row(v):
        return jnp.pad(v, (0, max_dim - v.shape[0]))

    wqkv_l, wo_l, w1_l, w2_l, vecs_l = [], [], [], [], []
    for p in params:
        wqkv = p["wqkv"].at[:, :inner].multiply(scale)   # fold scale (free)
        wqkv_l.append(wqkv)
        wo_l.append(p["wo"])
        w1_l.append(p["w1"])
        w2_l.append(p["w2"])
        rows = [pad_row(p["ln1_w"]), pad_row(p["ln1_b"]), pad_row(p["bo"]),
                pad_row(p["ln2_w"]), pad_row(p["ln2_b"]), pad_row(p["b1"]),
                pad_row(p["b2"]), jnp.zeros((max_dim,), jnp.float32)]
        vecs_l.append(jnp.stack(rows, axis=0))           # (8, max_dim)

    return {
        "wqkv": jnp.stack(wqkv_l),   # (depth, D, 3*inner)
        "wo":   jnp.stack(wo_l),     # (depth, inner, D)
        "w1":   jnp.stack(w1_l),     # (depth, D, H)
        "w2":   jnp.stack(w2_l),     # (depth, H, D)
        "vecs": jnp.stack(vecs_l),   # (depth, 8, max_dim)
    }


# ---------------------------------------------------------------------------
# Pure-JAX reference (uses the canonical, unfolded params — independent check)
# ---------------------------------------------------------------------------

def _ref_forward(x, params, *, heads, dim_head):
    def ln(v, w, b):
        m = jnp.mean(v, axis=-1, keepdims=True)
        s = jnp.mean((v - m) ** 2, axis=-1, keepdims=True)
        return (v - m) / jnp.sqrt(s + 1e-5) * w + b

    inner = heads * dim_head
    scale = dim_head ** -0.5
    for L in params:
        B, N, D = x.shape
        xn = ln(x, L["ln1_w"], L["ln1_b"])
        qkv = xn @ L["wqkv"]
        q, k, v = jnp.split(qkv, 3, axis=-1)
        q = q.reshape(B, N, heads, dim_head).transpose(0, 2, 1, 3)
        k = k.reshape(B, N, heads, dim_head).transpose(0, 2, 1, 3)
        v = v.reshape(B, N, heads, dim_head).transpose(0, 2, 1, 3)
        dots = jnp.einsum("bhid,bhjd->bhij", q, k) * scale
        attn = jax.nn.softmax(dots, axis=-1)
        out = jnp.einsum("bhij,bhjd->bhid", attn, v)
        out = out.transpose(0, 2, 1, 3).reshape(B, N, inner)
        x = out @ L["wo"] + L["bo"] + x
        xn = ln(x, L["ln2_w"], L["ln2_b"])
        h = xn @ L["w1"] + L["b1"]
        h = 0.5 * h * (1.0 + jax.lax.erf(h / math.sqrt(2.0)))
        x = h @ L["w2"] + L["b2"] + x
    return x


# ---------------------------------------------------------------------------
# Main
# ---------------------------------------------------------------------------

if __name__ == "__main__":
    # Module hyperparameters (small, consistent with the forward pass)
    dim = 32
    num_patches = 4          # Transformer makes N = num_patches**2 + 1 = 17
    depth = 2
    heads = 4
    dim_head = 8
    mlp_dim_ratio = 64       # FeedForward hidden_dim (passed directly in the module)
    batch = 2

    N = num_patches ** 2 + 1

    key = jax.random.PRNGKey(0)
    key, kx, kp = jax.random.split(key, 3)
    x = jax.random.normal(kx, (batch, N, dim), jnp.float32)

    params = make_params(kp, dim=dim, depth=depth, heads=heads,
                         dim_head=dim_head, mlp_hidden=mlp_dim_ratio)
    stacked = stack_params_for_kernel(params, heads=heads, dim_head=dim_head,
                                      dim=dim, mlp_hidden=mlp_dim_ratio)

    out = transformer_forward(x, stacked, depth=depth, heads=heads,
                              dim_head=dim_head, mlp_hidden=mlp_dim_ratio)
    out = jax.block_until_ready(out)

    # sanity check against a pure-JAX reference (tolerance loosened slightly to
    # account for the EUP approximate-reciprocal softmax normalization)
    ref = _ref_forward(x, params, heads=heads, dim_head=dim_head)
    assert out.shape == (batch, N, dim)
    assert jnp.allclose(out, ref, atol=2e-2, rtol=2e-2), "mismatch vs reference"

    print("KERNEL_OK")
</pallas_src>

<mosaic_0001>
module attributes {stable_mosaic.version = 11 : i64} {
  func.func @transformer_kernel(%arg0: i32, %arg1: i32, %arg2: memref<1x17x32xf32, #tpu.memory_space<vmem>>, %arg3: memref<1x32x96xf32, #tpu.memory_space<vmem>>, %arg4: memref<1x32x32xf32, #tpu.memory_space<vmem>>, %arg5: memref<1x8x64xf32, #tpu.memory_space<vmem>>, %arg6: memref<1x32x64xf32, #tpu.memory_space<vmem>>, %arg7: memref<1x64x32xf32, #tpu.memory_space<vmem>>, %arg8: memref<1x17x32xf32, #tpu.memory_space<vmem>>) attributes {dimension_semantics = [#tpu.dimension_semantics<parallel>, #tpu.dimension_semantics<arbitrary>], iteration_bounds = array<i64: 2, 2>, scalar_prefetch = 0 : i64, scratch_operands = 0 : i64, tpu.core_type = #tpu.core_type<tc>, window_params = [{transform_indices = @transform_0, window_bounds = array<i64: 1, 17, 32>}, {transform_indices = @transform_1, window_bounds = array<i64: 1, 32, 96>}, {transform_indices = @transform_2, window_bounds = array<i64: 1, 32, 32>}, {transform_indices = @transform_3, window_bounds = array<i64: 1, 8, 64>}, {transform_indices = @transform_4, window_bounds = array<i64: 1, 32, 64>}, {transform_indices = @transform_5, window_bounds = array<i64: 1, 64, 32>}, {transform_indices = @transform_6, window_bounds = array<i64: 1, 17, 32>}]} {
    %c0_i32 = arith.constant 0 : i32
    %0 = arith.cmpi eq, %arg1, %c0_i32 : i32
    %1 = arith.extui %0 : i1 to i32
    %c0_i32_0 = arith.constant 0 : i32
    %2 = arith.cmpi ne, %1, %c0_i32_0 : i32
    scf.if %2 {
      %c0_53 = arith.constant 0 : index
      %c0_54 = arith.constant 0 : index
      %c0_55 = arith.constant 0 : index
      %150 = vector.load %arg2[%c0_53, %c0_54, %c0_55] : memref<1x17x32xf32, #tpu.memory_space<vmem>>, vector<1x17x32xf32>
      %c0_56 = arith.constant 0 : index
      %c0_57 = arith.constant 0 : index
      %c0_58 = arith.constant 0 : index
      %151 = vector.load %arg8[%c0_56, %c0_57, %c0_58] : memref<1x17x32xf32, #tpu.memory_space<vmem>>, vector<1x17x32xf32>
      tpu.vector_store %arg8[%c0_56, %c0_57, %c0_58], %150 {strides = array<i32>} : memref<1x17x32xf32, #tpu.memory_space<vmem>>, vector<1x17x32xf32>,
    } else {
    }
    %c0 = arith.constant 0 : index
    %c0_1 = arith.constant 0 : index
    %c0_2 = arith.constant 0 : index
    %3 = vector.load %arg8[%c0, %c0_1, %c0_2] : memref<1x17x32xf32, #tpu.memory_space<vmem>>, vector<1x17x32xf32>
    %4 = vector.shape_cast %3 : vector<1x17x32xf32> to vector<17x32xf32>
    %c0_3 = arith.constant 0 : index
    %c0_4 = arith.constant 0 : index
    %c0_5 = arith.constant 0 : index
    %5 = vector.load %arg5[%c0_3, %c0_4, %c0_5] : memref<1x8x64xf32, #tpu.memory_space<vmem>>, vector<1x8x64xf32>
    %6 = vector.shape_cast %5 : vector<1x8x64xf32> to vector<8x64xf32>
    %7 = vector.extract_strided_slice %6 {offsets = [0, 0], sizes = [1, 32], strides = [1, 1]} : vector<8x64xf32> to vector<1x32xf32>
    %8 = vector.extract_strided_slice %6 {offsets = [1, 0], sizes = [1, 32], strides = [1, 1]} : vector<8x64xf32> to vector<1x32xf32>
    %9 = vector.extract_strided_slice %6 {offsets = [2, 0], sizes = [1, 32], strides = [1, 1]} : vector<8x64xf32> to vector<1x32xf32>
    %10 = vector.extract_strided_slice %6 {offsets = [3, 0], sizes = [1, 32], strides = [1, 1]} : vector<8x64xf32> to vector<1x32xf32>
    %11 = vector.extract_strided_slice %6 {offsets = [4, 0], sizes = [1, 32], strides = [1, 1]} : vector<8x64xf32> to vector<1x32xf32>
    %12 = vector.extract_strided_slice %6 {offsets = [5, 0], sizes = [1, 64], strides = [1, 1]} : vector<8x64xf32> to vector<1x64xf32>
    %13 = vector.extract_strided_slice %6 {offsets = [6, 0], sizes = [1, 32], strides = [1, 1]} : vector<8x64xf32> to vector<1x32xf32>
    %cst = arith.constant dense<0.000000e+00> : vector<17xf32>
    %14 = vector.multi_reduction <add>, %4, %cst [1] : vector<17x32xf32> to vector<17xf32>
    %15 = vector.shape_cast %14 : vector<17xf32> to vector<17x1xf32>
    %cst_6 = arith.constant 3.200000e+01 : f32
    %16 = vector.broadcast %cst_6 : f32 to vector<17x1xf32>
    %17 = arith.divf %15, %16 : vector<17x1xf32>
    %18 = vector.broadcast %17 : vector<17x1xf32> to vector<17x32xf32>
    %19 = arith.subf %4, %18 : vector<17x32xf32>
    %20 = arith.mulf %19, %19 : vector<17x32xf32>
    %cst_7 = arith.constant dense<0.000000e+00> : vector<17xf32>
    %21 = vector.multi_reduction <add>, %20, %cst_7 [1] : vector<17x32xf32> to vector<17xf32>
    %22 = vector.shape_cast %21 : vector<17xf32> to vector<17x1xf32>
    %cst_8 = arith.constant 3.200000e+01 : f32
    %23 = vector.broadcast %cst_8 : f32 to vector<17x1xf32>
    %24 = arith.divf %22, %23 : vector<17x1xf32>
    %25 = vector.broadcast %17 : vector<17x1xf32> to vector<17x32xf32>
    %26 = arith.subf %4, %25 : vector<17x32xf32>
    %cst_9 = arith.constant 9.99999974E-6 : f32
    %27 = vector.broadcast %cst_9 : f32 to vector<17x1xf32>
    %28 = arith.addf %24, %27 : vector<17x1xf32>
    %29 = math.rsqrt %28 : vector<17x1xf32>
    %30 = vector.broadcast %29 : vector<17x1xf32> to vector<17x32xf32>
    %31 = arith.mulf %26, %30 : vector<17x32xf32>
    %32 = vector.broadcast %7 : vector<1x32xf32> to vector<17x32xf32>
    %33 = arith.mulf %31, %32 : vector<17x32xf32>
    %34 = vector.broadcast %8 : vector<1x32xf32> to vector<17x32xf32>
    %35 = arith.addf %33, %34 : vector<17x32xf32>
    %c0_10 = arith.constant 0 : index
    %c0_11 = arith.constant 0 : index
    %c0_12 = arith.constant 0 : index
    %36 = vector.load %arg3[%c0_10, %c0_11, %c0_12] : memref<1x32x96xf32, #tpu.memory_space<vmem>>, vector<1x32x96xf32>
    %37 = vector.shape_cast %36 : vector<1x32x96xf32> to vector<32x96xf32>
    %cst_13 = arith.constant dense<0.000000e+00> : vector<17x96xf32>
    %38 = tpu.matmul %35, %37, %cst_13 {dimension_numbers = #tpu.dot_dimension_numbers<[1], [0], [0], [1], [0, 0, 1, 1], [], []>} : vector<17x32xf32>, vector<32x96xf32>, vector<17x96xf32> -> vector<17x96xf32>
    %39 = vector.extract_strided_slice %38 {offsets = [0, 0], sizes = [17, 8], strides = [1, 1]} : vector<17x96xf32> to vector<17x8xf32>
    %40 = vector.extract_strided_slice %38 {offsets = [0, 32], sizes = [17, 8], strides = [1, 1]} : vector<17x96xf32> to vector<17x8xf32>
    %41 = vector.extract_strided_slice %38 {offsets = [0, 64], sizes = [17, 8], strides = [1, 1]} : vector<17x96xf32> to vector<17x8xf32>
    %cst_14 = arith.constant dense<0.000000e+00> : vector<17x17xf32>
    %42 = tpu.matmul %39, %40, %cst_14 {dimension_numbers = #tpu.dot_dimension_numbers<[1], [1], [0], [0], [0, 0, 1, 0], [], []>} : vector<17x8xf32>, vector<17x8xf32>, vector<17x17xf32> -> vector<17x17xf32>
    %cst_15 = arith.constant dense<0xFF800000> : vector<17xf32>
    %43 = vector.multi_reduction <maximumf>, %42, %cst_15 [1] : vector<17x17xf32> to vector<17xf32>
    %44 = vector.shape_cast %43 : vector<17xf32> to vector<17x1xf32>
    %45 = vector.broadcast %44 : vector<17x1xf32> to vector<17x17xf32>
    %46 = arith.subf %42, %45 : vector<17x17xf32>
    %47 = math.exp %46 : vector<17x17xf32>
    %cst_16 = arith.constant dense<0.000000e+00> : vector<17xf32>
    %48 = vector.multi_reduction <add>, %47, %cst_16 [1] : vector<17x17xf32> to vector<17xf32>
    %49 = vector.shape_cast %48 : vector<17xf32> to vector<17x1xf32>
    %50 = tpu.reciprocal %49 {approx = true} : vector<17x1xf32> -> vector<17x1xf32>
    %51 = vector.broadcast %50 : vector<17x1xf32> to vector<17x17xf32>
    %52 = arith.mulf %47, %51 : vector<17x17xf32>
    %cst_17 = arith.constant dense<0.000000e+00> : vector<17x8xf32>
    %53 = tpu.matmul %52, %41, %cst_17 {dimension_numbers = #tpu.dot_dimension_numbers<[1], [0], [0], [1], [0, 0, 1, 1], [], []>} : vector<17x17xf32>, vector<17x8xf32>, vector<17x8xf32> -> vector<17x8xf32>
    %54 = vector.extract_strided_slice %38 {offsets = [0, 8], sizes = [17, 8], strides = [1, 1]} : vector<17x96xf32> to vector<17x8xf32>
    %55 = vector.extract_strided_slice %38 {offsets = [0, 40], sizes = [17, 8], strides = [1, 1]} : vector<17x96xf32> to vector<17x8xf32>
    %56 = vector.extract_strided_slice %38 {offsets = [0, 72], sizes = [17, 8], strides = [1, 1]} : vector<17x96xf32> to vector<17x8xf32>
    %cst_18 = arith.constant dense<0.000000e+00> : vector<17x17xf32>
    %57 = tpu.matmul %54, %55, %cst_18 {dimension_numbers = #tpu.dot_dimension_numbers<[1], [1], [0], [0], [0, 0, 1, 0], [], []>} : vector<17x8xf32>, vector<17x8xf32>, vector<17x17xf32> -> vector<17x17xf32>
    %cst_19 = arith.constant dense<0xFF800000> : vector<17xf32>
    %58 = vector.multi_reduction <maximumf>, %57, %cst_19 [1] : vector<17x17xf32> to vector<17xf32>
    %59 = vector.shape_cast %58 : vector<17xf32> to vector<17x1xf32>
    %60 = vector.broadcast %59 : vector<17x1xf32> to vector<17x17xf32>
    %61 = arith.subf %57, %60 : vector<17x17xf32>
    %62 = math.exp %61 : vector<17x17xf32>
    %cst_20 = arith.constant dense<0.000000e+00> : vector<17xf32>
    %63 = vector.multi_reduction <add>, %62, %cst_20 [1] : vector<17x17xf32> to vector<17xf32>
    %64 = vector.shape_cast %63 : vector<17xf32> to vector<17x1xf32>
    %65 = tpu.reciprocal %64 {approx = true} : vector<17x1xf32> -> vector<17x1xf32>
    %66 = vector.broadcast %65 : vector<17x1xf32> to vector<17x17xf32>
    %67 = arith.mulf %62, %66 : vector<17x17xf32>
    %cst_21 = arith.constant dense<0.000000e+00> : vector<17x8xf32>
    %68 = tpu.matmul %67, %56, %cst_21 {dimension_numbers = #tpu.dot_dimension_numbers<[1], [0], [0], [1], [0, 0, 1, 1], [], []>} : vector<17x17xf32>, vector<17x8xf32>, vector<17x8xf32> -> vector<17x8xf32>
    %69 = vector.extract_strided_slice %38 {offsets = [0, 16], sizes = [17, 8], strides = [1, 1]} : vector<17x96xf32> to vector<17x8xf32>
    %70 = vector.extract_strided_slice %38 {offsets = [0, 48], sizes = [17, 8], strides = [1, 1]} : vector<17x96xf32> to vector<17x8xf32>
    %71 = vector.extract_strided_slice %38 {offsets = [0, 80], sizes = [17, 8], strides = [1, 1]} : vector<17x96xf32> to vector<17x8xf32>
    %cst_22 = arith.constant dense<0.000000e+00> : vector<17x17xf32>
    %72 = tpu.matmul %69, %70, %cst_22 {dimension_numbers = #tpu.dot_dimension_numbers<[1], [1], [0], [0], [0, 0, 1, 0], [], []>} : vector<17x8xf32>, vector<17x8xf32>, vector<17x17xf32> -> vector<17x17xf32>
    %cst_23 = arith.constant dense<0xFF800000> : vector<17xf32>
    %73 = vector.multi_reduction <maximumf>, %72, %cst_23 [1] : vector<17x17xf32> to vector<17xf32>
    %74 = vector.shape_cast %73 : vector<17xf32> to vector<17x1xf32>
    %75 = vector.broadcast %74 : vector<17x1xf32> to vector<17x17xf32>
    %76 = arith.subf %72, %75 : vector<17x17xf32>
    %77 = math.exp %76 : vector<17x17xf32>
    %cst_24 = arith.constant dense<0.000000e+00> : vector<17xf32>
    %78 = vector.multi_reduction <add>, %77, %cst_24 [1] : vector<17x17xf32> to vector<17xf32>
    %79 = vector.shape_cast %78 : vector<17xf32> to vector<17x1xf32>
    %80 = tpu.reciprocal %79 {approx = true} : vector<17x1xf32> -> vector<17x1xf32>
    %81 = vector.broadcast %80 : vector<17x1xf32> to vector<17x17xf32>
    %82 = arith.mulf %77, %81 : vector<17x17xf32>
    %cst_25 = arith.constant dense<0.000000e+00> : vector<17x8xf32>
    %83 = tpu.matmul %82, %71, %cst_25 {dimension_numbers = #tpu.dot_dimension_numbers<[1], [0], [0], [1], [0, 0, 1, 1], [], []>} : vector<17x17xf32>, vector<17x8xf32>, vector<17x8xf32> -> vector<17x8xf32>
    %84 = vector.extract_strided_slice %38 {offsets = [0, 24], sizes = [17, 8], strides = [1, 1]} : vector<17x96xf32> to vector<17x8xf32>
    %85 = vector.extract_strided_slice %38 {offsets = [0, 56], sizes = [17, 8], strides = [1, 1]} : vector<17x96xf32> to vector<17x8xf32>
    %86 = vector.extract_strided_slice %38 {offsets = [0, 88], sizes = [17, 8], strides = [1, 1]} : vector<17x96xf32> to vector<17x8xf32>
    %cst_26 = arith.constant dense<0.000000e+00> : vector<17x17xf32>
    %87 = tpu.matmul %84, %85, %cst_26 {dimension_numbers = #tpu.dot_dimension_numbers<[1], [1], [0], [0], [0, 0, 1, 0], [], []>} : vector<17x8xf32>, vector<17x8xf32>, vector<17x17xf32> -> vector<17x17xf32>
    %cst_27 = arith.constant dense<0xFF800000> : vector<17xf32>
    %88 = vector.multi_reduction <maximumf>, %87, %cst_27 [1] : vector<17x17xf32> to vector<17xf32>
    %89 = vector.shape_cast %88 : vector<17xf32> to vector<17x1xf32>
    %90 = vector.broadcast %89 : vector<17x1xf32> to vector<17x17xf32>
    %91 = arith.subf %87, %90 : vector<17x17xf32>
    %92 = math.exp %91 : vector<17x17xf32>
    %cst_28 = arith.constant dense<0.000000e+00> : vector<17xf32>
    %93 = vector.multi_reduction <add>, %92, %cst_28 [1] : vector<17x17xf32> to vector<17xf32>
    %94 = vector.shape_cast %93 : vector<17xf32> to vector<17x1xf32>
    %95 = tpu.reciprocal %94 {approx = true} : vector<17x1xf32> -> vector<17x1xf32>
    %96 = vector.broadcast %95 : vector<17x1xf32> to vector<17x17xf32>
    %97 = arith.mulf %92, %96 : vector<17x17xf32>
    %cst_29 = arith.constant dense<0.000000e+00> : vector<17x8xf32>
    %98 = tpu.matmul %97, %86, %cst_29 {dimension_numbers = #tpu.dot_dimension_numbers<[1], [0], [0], [1], [0, 0, 1, 1], [], []>} : vector<17x17xf32>, vector<17x8xf32>, vector<17x8xf32> -> vector<17x8xf32>
    %99 = tpu.concatenate %53, %68, %83, %98 in 1 : vector<17x8xf32>, vector<17x8xf32>, vector<17x8xf32>, vector<17x8xf32> -> vector<17x32xf32>
    %c0_30 = arith.constant 0 : index
    %c0_31 = arith.constant 0 : index
    %c0_32 = arith.constant 0 : index
    %100 = vector.load %arg4[%c0_30, %c0_31, %c0_32] : memref<1x32x32xf32, #tpu.memory_space<vmem>>, vector<1x32x32xf32>
    %101 = vector.shape_cast %100 : vector<1x32x32xf32> to vector<32x32xf32>
    %cst_33 = arith.constant dense<0.000000e+00> : vector<17x32xf32>
    %102 = tpu.matmul %99, %101, %cst_33 {dimension_numbers = #tpu.dot_dimension_numbers<[1], [0], [0], [1], [0, 0, 1, 1], [], []>} : vector<17x32xf32>, vector<32x32xf32>, vector<17x32xf32> -> vector<17x32xf32>
    %103 = vector.broadcast %9 : vector<1x32xf32> to vector<17x32xf32>
    %104 = arith.addf %102, %103 : vector<17x32xf32>
    %105 = arith.addf %4, %104 : vector<17x32xf32>
    %cst_34 = arith.constant dense<0.000000e+00> : vector<17xf32>
    %106 = vector.multi_reduction <add>, %105, %cst_34 [1] : vector<17x32xf32> to vector<17xf32>
    %107 = vector.shape_cast %106 : vector<17xf32> to vector<17x1xf32>
    %cst_35 = arith.constant 3.200000e+01 : f32
    %108 = vector.broadcast %cst_35 : f32 to vector<17x1xf32>
    %109 = arith.divf %107, %108 : vector<17x1xf32>
    %110 = vector.broadcast %109 : vector<17x1xf32> to vector<17x32xf32>
    %111 = arith.subf %105, %110 : vector<17x32xf32>
    %112 = arith.mulf %111, %111 : vector<17x32xf32>
    %cst_36 = arith.constant dense<0.000000e+00> : vector<17xf32>
    %113 = vector.multi_reduction <add>, %112, %cst_36 [1] : vector<17x32xf32> to vector<17xf32>
    %114 = vector.shape_cast %113 : vector<17xf32> to vector<17x1xf32>
    %cst_37 = arith.constant 3.200000e+01 : f32
    %115 = vector.broadcast %cst_37 : f32 to vector<17x1xf32>
    %116 = arith.divf %114, %115 : vector<17x1xf32>
    %117 = vector.broadcast %109 : vector<17x1xf32> to vector<17x32xf32>
    %118 = arith.subf %105, %117 : vector<17x32xf32>
    %cst_38 = arith.constant 9.99999974E-6 : f32
    %119 = vector.broadcast %cst_38 : f32 to vector<17x1xf32>
    %120 = arith.addf %116, %119 : vector<17x1xf32>
    %121 = math.rsqrt %120 : vector<17x1xf32>
    %122 = vector.broadcast %121 : vector<17x1xf32> to vector<17x32xf32>
    %123 = arith.mulf %118, %122 : vector<17x32xf32>
    %124 = vector.broadcast %10 : vector<1x32xf32> to vector<17x32xf32>
    %125 = arith.mulf %123, %124 : vector<17x32xf32>
    %126 = vector.broadcast %11 : vector<1x32xf32> to vector<17x32xf32>
    %127 = arith.addf %125, %126 : vector<17x32xf32>
    %c0_39 = arith.constant 0 : index
    %c0_40 = arith.constant 0 : index
    %c0_41 = arith.constant 0 : index
    %128 = vector.load %arg6[%c0_39, %c0_40, %c0_41] : memref<1x32x64xf32, #tpu.memory_space<vmem>>, vector<1x32x64xf32>
    %129 = vector.shape_cast %128 : vector<1x32x64xf32> to vector<32x64xf32>
    %cst_42 = arith.constant dense<0.000000e+00> : vector<17x64xf32>
    %130 = tpu.matmul %127, %129, %cst_42 {dimension_numbers = #tpu.dot_dimension_numbers<[1], [0], [0], [1], [0, 0, 1, 1], [], []>} : vector<17x32xf32>, vector<32x64xf32>, vector<17x64xf32> -> vector<17x64xf32>
    %131 = vector.broadcast %12 : vector<1x64xf32> to vector<17x64xf32>
    %132 = arith.addf %130, %131 : vector<17x64xf32>
    %cst_43 = arith.constant 5.000000e-01 : f32
    %133 = vector.broadcast %cst_43 : f32 to vector<17x64xf32>
    %134 = arith.mulf %133, %132 : vector<17x64xf32>
    %cst_44 = arith.constant 0.707106769 : f32
    %135 = vector.broadcast %cst_44 : f32 to vector<17x64xf32>
    %136 = arith.mulf %132, %135 : vector<17x64xf32>
    %137 = math.erf %136 : vector<17x64xf32>
    %cst_45 = arith.constant 1.000000e+00 : f32
    %138 = vector.broadcast %cst_45 : f32 to vector<17x64xf32>
    %139 = arith.addf %138, %137 : vector<17x64xf32>
    %140 = arith.mulf %134, %139 : vector<17x64xf32>
    %c0_46 = arith.constant 0 : index
    %c0_47 = arith.constant 0 : index
    %c0_48 = arith.constant 0 : index
    %141 = vector.load %arg7[%c0_46, %c0_47, %c0_48] : memref<1x64x32xf32, #tpu.memory_space<vmem>>, vector<1x64x32xf32>
    %142 = vector.shape_cast %141 : vector<1x64x32xf32> to vector<64x32xf32>
    %cst_49 = arith.constant dense<0.000000e+00> : vector<17x32xf32>
    %143 = tpu.matmul %140, %142, %cst_49 {dimension_numbers = #tpu.dot_dimension_numbers<[1], [0], [0], [1], [0, 0, 1, 1], [], []>} : vector<17x64xf32>, vector<64x32xf32>, vector<17x32xf32> -> vector<17x32xf32>
    %144 = vector.broadcast %13 : vector<1x32xf32> to vector<17x32xf32>
    %145 = arith.addf %143, %144 : vector<17x32xf32>
    %146 = arith.addf %105, %145 : vector<17x32xf32>
    %c0_50 = arith.constant 0 : index
    %c0_51 = arith.constant 0 : index
    %c0_52 = arith.constant 0 : index
    %147 = vector.load %arg8[%c0_50, %c0_51, %c0_52] : memref<1x17x32xf32, #tpu.memory_space<vmem>>, vector<1x17x32xf32>
    %148 = vector.shape_cast %147 : vector<1x17x32xf32> to vector<17x32xf32>
    %149 = vector.shape_cast %146 : vector<17x32xf32> to vector<1x17x32xf32>
    tpu.vector_store %arg8[%c0_50, %c0_51, %c0_52], %149 {strides = array<i32>} : memref<1x17x32xf32, #tpu.memory_space<vmem>>, vector<1x17x32xf32>,
    return
  }
  func.func @transform_0(%arg0: i32, %arg1: i32) -> (i32, i32, i32) {
    %c0_i32 = arith.constant 0 : i32
    %c0_i32_0 = arith.constant 0 : i32
    %c0_i32_1 = arith.constant 0 : i32
    return %arg0, %c0_i32, %c0_i32_0 : i32, i32, i32
  }
  func.func @transform_1(%arg0: i32, %arg1: i32) -> (i32, i32, i32) {
    %c0_i32 = arith.constant 0 : i32
    %c0_i32_0 = arith.constant 0 : i32
    %c0_i32_1 = arith.constant 0 : i32
    return %arg1, %c0_i32, %c0_i32_0 : i32, i32, i32
  }
  func.func @transform_2(%arg0: i32, %arg1: i32) -> (i32, i32, i32) {
    %c0_i32 = arith.constant 0 : i32
    %c0_i32_0 = arith.constant 0 : i32
    %c0_i32_1 = arith.constant 0 : i32
    return %arg1, %c0_i32, %c0_i32_0 : i32, i32, i32
  }
  func.func @transform_3(%arg0: i32, %arg1: i32) -> (i32, i32, i32) {
    %c0_i32 = arith.constant 0 : i32
    %c0_i32_0 = arith.constant 0 : i32
    %c0_i32_1 = arith.constant 0 : i32
    return %arg1, %c0_i32, %c0_i32_0 : i32, i32, i32
  }
  func.func @transform_4(%arg0: i32, %arg1: i32) -> (i32, i32, i32) {
    %c0_i32 = arith.constant 0 : i32
    %c0_i32_0 = arith.constant 0 : i32
    %c0_i32_1 = arith.constant 0 : i32
    return %arg1, %c0_i32, %c0_i32_0 : i32, i32, i32
  }
  func.func @transform_5(%arg0: i32, %arg1: i32) -> (i32, i32, i32) {
    %c0_i32 = arith.constant 0 : i32
    %c0_i32_0 = arith.constant 0 : i32
    %c0_i32_1 = arith.constant 0 : i32
    return %arg1, %c0_i32, %c0_i32_0 : i32, i32, i32
  }
  func.func @transform_6(%arg0: i32, %arg1: i32) -> (i32, i32, i32) {
    %c0_i32 = arith.constant 0 : i32
    %c0_i32_0 = arith.constant 0 : i32
    %c0_i32_1 = arith.constant 0 : i32
    return %arg0, %c0_i32, %c0_i32_0 : i32, i32, i32
  }
}

</mosaic_0001>

<bundles_post_ra>
// kernel: tpu_custom_call.1
= control target key start
LH: loop header
LB: loop body
LE: loop exit
PB: predicated region body
PF: predicated region fallthrough
CT: control target
= control target key end

     0   :  { %s2592_s21 = smov 0   ;;  %s2594_s22 = smov 0   ;;  %s3082_s0 = inlined_call_operand.vmem [shape: f32[2,17,32], index: 0, kind: input, shape index: {}]   ;;  %s3083_s1 = inlined_call_operand.vmem [shape: f32[2,32,96], index: 1, kind: input, shape index: {}]   ;;  %s3084_s2 = inlined_call_operand.vmem [shape: f32[2,32,32], index: 2, kind: input, shape index: {}]   ;;  %s3085_s3 = inlined_call_operand.vmem [shape: f32[2,8,64], index: 3, kind: input, shape index: {}]   ;;  %s3086_s4 = inlined_call_operand.vmem [shape: f32[2,32,64], index: 4, kind: input, shape index: {}]   ;;  %s3087_s5 = inlined_call_operand.vmem [shape: f32[2,64,32], index: 5, kind: input, shape index: {}]   ;;  %s3088_s6 = inlined_call_operand.vmem [shape: f32[2,17,32], index: 6, kind: output, shape index: {}]  }
   0x1   :  { %3089 = sst [smem:[#allocation2_spill]] %s3082_s0  ;;  %s2596_s23 = smov 0  }
   0x2   :  { %3090 = sst [smem:[#allocation3_spill]] %s3083_s1  ;;  %s2598_s24 = smov 0  }
   0x3   :  { %s2600_s25 = smov 0  }
   0x4 LB: > { %s25_s26 = sadd.s32 1, %s2531_s23  ;;  %s28_s27 = sadd.s32 1, %s2535_s24  ;;  %s2539_s25 = sphi %s2600_s25, %s16_s25   ;;  %s2535_s24 = sphi %s2598_s24, %s3096_s24   ;;  %s2531_s23 = sphi %s2596_s23, %s3095_s23   ;;  %s2527_s22 = sphi %s2594_s22, %s3094_s22   ;;  %s2523_s21 = sphi %s2592_s21, %s3093_s21  }
   0x5   : > { %p26_p0 = scmp.ge.s32.totalorder %s25_s26, 2  ;;  %p2021_p1 = scmp.ge.s32.totalorder %s2539_s25, 1 }
   0x6   : > { %p273_p2 = scmp.lt.s32.totalorder %s2539_s25, 5 }
   0x7   : > { %s3098_s26 = smov (%p26_p0, %s25_s26), 0  ;;  %s3100_s27 = smov (!%p26_p0, %s28_s27), %s2535_s24 }
   0x8   : > { %p274_p3 = pnand %p2021_p1, %p273_p2  ;;  %p30_p4 = scmp.ge.s32.totalorder %s3100_s27, 2 }
   0x9   : > { %p327_p5 = scmp.lt.s32.totalorder (!%p274_p3), %s2527_s22, 1  ;;  %p332_p6 = scmp.lt.s32.totalorder (!%p274_p3), %s2523_s21, 1 }
   0xa   : > { %s3102_s27 = smov (%p30_p4, %s3100_s27), 0  ;;  %277 = sbr.rel (%p274_p3) target bundleno = 3045 (0xbe5), region = 44 }
   0xb   : > { %s3091_s0 = sld [smem:[#allocation2_spill]] (!%p274_p3)  ;;  %p2033_p7 = scmp.ne.s32.totalorder (!%p274_p3), %s2523_s21, 0 }
   0xc   : > { %s3092_s1 = sld [smem:[#allocation3_spill]] (!%p274_p3) }
   0xf   : > { %s3104_s22 = smov (!%p327_p5, %s2527_s22), 1 }
  0x10   : > { %s333_s28 = scalar_select %p332_p6, %s2523_s21, 1 }
  0x11   : > { %s2374_s29 = smul.u32 24, %s3104_s22 }
  0x12   : > { %s2088_s30 = sshll.u32 %s333_s28, 5  ;;  %s2027_s7 = sshll.u32 %s333_s28, 3 }
  0x13   : > { %s331_s10 = scalar_lea.vmem %s3091_s0, %s2374_s29  ;;  %s2632_s13 = scalar_lea.vmem %s3092_s1, %s2088_s30 }
  0x14   : > { %s2637_s16 = scalar_lea.vmem %s3084_s2, %s2088_s30  ;;  %s2642_s19 = scalar_lea.vmem %s3085_s3, %s2027_s7 }
  0x15   : > { %s2647_s8 = scalar_lea.vmem %s3086_s4, %s2088_s30  ;;  %s2091_s9 = sshll.u32 %s333_s28, 6 }
  0x16   : > { %s2652_s12 = scalar_lea.vmem %s3087_s5, %s2091_s9  ;;  %s2657_s15 = scalar_lea.vmem %s3088_s6, %s2374_s29 }
  0x17   : > { %364 = sbr.rel (%p2033_p7) target bundleno = 31 (0x1f), region = 48 }
  0x1c   : > { %v365_v0 = vld [vmem:[%s331_s10] sm:$0xff]  ;;  %vm368_vm0 = vcmask 261120   ;;  %v366_v1 = vld [vmem:[%s331_s10 + $0x8] sm:$0xff]  ;;  %v367_v2 = vld [vmem:[%s331_s10 + $0x10] sm:$0x1]  ;;  %vm371_vm1 = vcmask 253952  }
  0x1d   : > { %369 = vst.msk [vmem:[%s2657_s15] sm:$0xff] %vm368_vm0, %v365_v0  ;;  %370 = vst.msk [vmem:[%s2657_s15 + $0x8] sm:$0xff] %vm368_vm0, %v366_v1 }
  0x1e   : > { %372 = vst.msk [vmem:[%s2657_s15 + $0x10] sm:$0x1] %vm371_vm1, %v367_v2 }
  0x1f PF: > { %vm377_vm2 = vcmask 261120   ;;  %vm384_vm3 = vcmask 253952   ;;  %v436_v24 = vld [vmem:[%s2632_s13 + $0x18] sm:$0xff]  ;;  %v2541_v25 = vmov 0.0   ;;  %v435_v26 = vld [vmem:[%s2632_s13 + $0x10] sm:$0xff]  ;;  %vm2542_vm4 = vmmov 0  }
  0x20   : > { %2172 = vmatprep.subr.mxu0 %v2541_v25  ;;  %2180 = vmatprep.mubr.msk.f32.mxu0 %vm2542_vm4, %v2541_v25  ;;  %v434_v27 = vld [vmem:[%s2632_s13 + $0x8] sm:$0xff]  ;;  %v433_v28 = vld [vmem:[%s2632_s13] sm:$0xff]  ;;  %v419_v36 = vlaneseq  ;;  %s2543_s0 = smov 96   ;;  %s2544_s1 = smov 88   ;;  %vm535_vm5 = vcmask 64512   ;;  %vm680_vm6 = vcmask 1040384  }
  0x21   : > { %2173 = vmatpush3.msra.mxu0 %v436_v24  ;;  %2189 = vmatprep.subr.mxu1 %v2541_v25  ;;  %v2690_v41 = vld [vmem:[%s2642_s19] sm:$0xff]  ;;  %s2545_s21 = smov 120   ;;  %s2546_s28 = smov 80   ;;  %vm628_vm7 = vcmask 138240   ;;  %vm635_vm8 = vcmask 131072   ;;  %vm1510_vm9 = vcmask 130048  }
  0x22   : > { %2174 = vmatprep.subr.mxu0 %v2541_v25  ;;  %2195 = vmatprep.mubr.msk.f32.mxu1 %vm2542_vm4, %v2541_v25  ;;  %v2686_v39 = vshrl.u32 %v419_v36, 7  ;;  %s2547_s29 = smov 112   ;;  %s2548_s30 = smov 64   ;;  %vm1514_vm10 = vcmask 195584   ;;  %vm1795_vm11 = vcmask 523264  }
  0x23   : > { %2175 = vmatpush3.msra.mxu0 %v435_v26  ;;  %s2549_s7 = smov 56   ;;  %s2550_s10 = smov 48  }
  0x24   : > { %v373_v3 = vld [vmem:[%s2657_s15] sm:$0xff]  ;;  %v374_v5 = vld [vmem:[%s2657_s15 + $0x8] sm:$0xff]  ;;  %2176 = vmatprep.subr.mxu0 %v2541_v25  ;;  %v421_v40 = vsub.s32 0, %v2686_v39  ;;  %v428_v42 = vsub.s32 1, %v2686_v39  ;;  %s2551_s13 = smov 72   ;;  %s2552_s17 = smov 104  }
  0x25   : > { %v375_v4 = vld [vmem:[%s2657_s15 + $0x10] sm:$0x1]  ;;  %v378_v6 = vsel %vm377_vm2, %v373_v3, 0.0  ;;  %v381_v8 = vsel %vm377_vm2, %v374_v5, 0.0  ;;  %2177 = vmatpush3.msra.mxu0 %v434_v27  ;;  %s2553_s18 = smov 40   ;;  %s2554_s20 = smov 16  }
  0x26   : > { %v385_v7 = vsel %vm384_vm3, %v375_v4, 0.0  ;;  %379 = vadd.xlane.f32.xlu0 %v378_v6  ;;  %2178 = vmatprep.subr.mxu0 %v2541_v25  ;;  %v422_v43 = vrot.slane %v2690_v41, %v421_v40  ;;  %v429_v46 = vrot.slane %v2690_v41, %v428_v42  ;;  %s2555_s22 = smov 8   ;;  %s2556_s9 = smov 24  }
  0x27   : > { %386 = vadd.xlane.f32.xlu1 %v385_v7  ;;  %2179 = vmatpush3.msra.mxu0 %v433_v28 }
  0x28   : > { %2204 = vmatprep.subr.mxu0 %v2541_v25 }
  0x2a   : > { %382 = vadd.xlane.f32.xlu0 %v381_v8 }
  0xaf   : > { %v380_v9 = vpop.xlane.xlu0 %379 }
  0xb0   : > { %v387_v10 = vpop.xlane.xlu1 %386  ;;  %v389_v11 = vmul.f32 0.03125, %v380_v9 }
  0xb1   : > { %v391_v12 = vmul.f32 0.03125, %v387_v10 }
  0xb2   : > { %v392_v13 = vsub.f32 %v373_v3, %v389_v11 }
  0xb3   : > { %v394_v14 = vsub.f32 %v375_v4, %v391_v12  ;;  %v383_v15 = vpop.xlane.xlu0 %382 }
  0xb4   : > { %v390_v16 = vmul.f32 0.03125, %v383_v15  ;;  %v395_v17 = vmul.f32 %v392_v13, %v392_v13 }
  0xb5   : > { %v397_v18 = vmul.f32 %v394_v14, %v394_v14 }
  0xb6   : > { %v393_v19 = vsub.f32 %v374_v5, %v390_v16  ;;  %v398_v20 = vsel %vm377_vm2, %v395_v17, 0.0 }
  0xb7   : > { %399 = vadd.xlane.f32.xlu1 %v398_v20  ;;  %v404_v21 = vsel %vm384_vm3, %v397_v18, 0.0 }
  0xb8   : > { %v396_v22 = vmul.f32 %v393_v19, %v393_v19 }
  0xba   : > { %v401_v23 = vsel %vm377_vm2, %v396_v22, 0.0 }
  0xbb   : > { %405 = vadd.xlane.f32.xlu1 %v404_v21  ;;  %402 = vadd.xlane.f32.xlu0 %v401_v23 }
 0x140   : > { %v400_v29 = vpop.xlane.xlu1 %399 }
 0x141   : > { %v407_v30 = vmul.f32 0.03125, %v400_v29 }
 0x143   : > { %v410_v31 = vadd.f32 1e-05, %v407_v30 }
 0x144   : > { %v406_v32 = vpop.xlane.xlu1 %405  ;;  %v403_v33 = vpop.xlane.xlu0 %402 }
 0x145   : > { %2431 = vrsqrt.f32 %v410_v31  ;;  %v409_v34 = vmul.f32 0.03125, %v406_v32  ;;  %v408_v35 = vmul.f32 0.03125, %v403_v33 }
 0x147   : > { %v412_v37 = vadd.f32 1e-05, %v409_v34  ;;  %v411_v38 = vadd.f32 1e-05, %v408_v35 }
 0x149   : > { %2433 = vrsqrt.f32 %v412_v37 }
 0x14a   : > { %2435 = vrsqrt.f32 %v411_v38 }
 0x152   : > { %v2432_v44 = vpop.eup %2431 }
 0x153   : > { %v416_v45 = vmul.f32 %v2432_v44, %v392_v13 }
 0x155   : > { %v423_v47 = vmul.f32 %v422_v43, %v416_v45 }
 0x156   : > { %v2434_v48 = vpop.eup %2433 }
 0x157   : > { %v2436_v49 = vpop.eup %2435  ;;  %v430_v50 = vadd.f32 %v429_v46, %v423_v47  ;;  %v418_v52 = vmul.f32 %v2434_v48, %v394_v14 }
 0x158   : > { %v417_v51 = vmul.f32 %v2436_v49, %v393_v19 }
 0x159   : > { %2181 = vmatmul.mubr.msk.f32.vlgmr.msra.gmra.mxu0 %vm377_vm2, %v430_v50  ;;  %v425_v55 = vmul.f32 %v422_v43, %v418_v52 }
 0x15a   : > { %2183 = vmatprep.mubr.msk.f32.mxu0 %vm2542_vm4, %v2541_v25  ;;  %v424_v53 = vmul.f32 %v422_v43, %v417_v51 }
 0x15b   : > { %v432_v56 = vadd.f32 %v429_v46, %v425_v55 }
 0x15c   : > { %v431_v54 = vadd.f32 %v429_v46, %v424_v53 }
 0x15e   : > { %2184 = vmatmul.mubr.msk.f32.gmra.mxu0 %vm377_vm2, %v431_v54 }
 0x15f   : > { %2186 = vmatprep.mubr.msk.f32.mxu0 %vm2542_vm4, %v2541_v25 }
 0x162   : > { %2187 = vmatmul.mubr.msk.f32.gmra.mxu0 %vm377_vm2, %v432_v56 }
 0x163   : > { %2210 = vmatprep.mubr.msk.f32.mxu0 %vm2542_vm4, %v2541_v25 }
 0x219   : > { %v2704_v57 = vpop.f32.mrf.mxu0 }
 0x21b   : > { %v2182_v58 = vpop.f32.mrf.mxu0 }
 0x21e   : > { %v2706_v59 = vpop.f32.mrf.mxu0 }
 0x21f   : > { %531 = vrot.lane.b32.xlu1 %v2706_v59, %s2543_s0 }
 0x220   : > { %v2185_v60 = vpop.f32.mrf.mxu0 }
 0x222   : > { %v2709_v61 = vpop.f32.mrf.mxu0 }
 0x223   : > { %529 = vrot.lane.b32.xlu1 %v2704_v57, %s2543_s0  ;;  %533 = vrot.lane.b32.xlu0 %v2709_v61, %s2543_s0 }
 0x224   : > { %v2188_v62 = vpop.f32.mrf.mxu0 }
 0x227   : > { %773 = vrot.lane.b32.xlu1 %v2709_v61, %s2544_s1  ;;  %771 = vrot.lane.b32.xlu0 %v2706_v59, %s2544_s1 }
 0x22b   : > { %769 = vrot.lane.b32.xlu1 %v2704_v57, %s2544_s1  ;;  %763 = vrot.lane.b32.xlu0 %v2704_v57, %s2545_s21 }
 0x22f   : > { %1009 = vrot.lane.b32.xlu1 %v2709_v61, %s2546_s28  ;;  %765 = vrot.lane.b32.xlu0 %v2706_v59, %s2545_s21 }
 0x233   : > { %1007 = vrot.lane.b32.xlu1 %v2706_v59, %s2546_s28  ;;  %767 = vrot.lane.b32.xlu0 %v2709_v61, %s2545_s21 }
 0x237   : > { %1005 = vrot.lane.b32.xlu1 %v2704_v57, %s2546_s28  ;;  %999 = vrot.lane.b32.xlu0 %v2704_v57, %s2547_s29 }
 0x23b   : > { %1001 = vrot.lane.b32.xlu1 %v2706_v59, %s2547_s29  ;;  %1003 = vrot.lane.b32.xlu0 %v2709_v61, %s2547_s29 }
 0x23f   : > { %665 = vrot.lane.b32.xlu1 %v2706_v59, %s2548_s30  ;;  %667 = vrot.lane.b32.xlu0 %v2709_v61, %s2548_s30 }
 0x243   : > { %663 = vrot.lane.b32.xlu1 %v2704_v57, %s2548_s30  ;;  %904 = vrot.lane.b32.xlu0 %v2709_v61, %s2549_s7 }
 0x247   : > { %902 = vrot.lane.b32.xlu1 %v2706_v59, %s2549_s7 }
 0x291   : > { %v532_v63 = vpop.permute.xlu1 %531 }
 0x295   : > { %v530_v0 = vpop.permute.xlu1 %529  ;;  %v534_v1 = vpop.permute.xlu0 %533 }
 0x296   : > { %2190 = vmatpush3.xpose.msk.msra.mxu1 %vm535_vm5, %v534_v1 }
 0x297   : > { %2191 = vmatprep.subr.mxu1 %v2541_v25 }
 0x299   : > { %v774_v2 = vpop.permute.xlu1 %773  ;;  %v772_v3 = vpop.permute.xlu0 %771 }
 0x29a   : > { %2192 = vmatpush3.xpose.msk.msra.mxu1 %vm535_vm5, %v532_v63 }
 0x29b   : > { %2193 = vmatprep.subr.mxu1 %v2541_v25 }
 0x29d   : > { %v770_v4 = vpop.permute.xlu1 %769  ;;  %v764_v5 = vpop.permute.xlu0 %763 }
 0x29e   : > { %2194 = vmatpush3.xpose.msk.msra.mxu1 %vm535_vm5, %v530_v0 }
 0x29f   : > { %2219 = vmatprep.subr.mxu1 %v2541_v25 }
 0x2a1   : > { %v1010_v6 = vpop.permute.xlu1 %1009  ;;  %2196 = vmatmul.mubr.msk.f32.vlgmr.msra.gmra.mxu1 %vm535_vm5, %v2704_v57  ;;  %v766_v7 = vpop.permute.xlu0 %765 }
 0x2a2   : > { %2220 = vmatpush3.xpose.msk.msra.mxu1 %vm535_vm5, %v774_v2  ;;  %2198 = vmatprep.mubr.msk.f32.mxu1 %vm2542_vm4, %v2541_v25 }
 0x2a3   : > { %2221 = vmatprep.subr.mxu1 %v2541_v25 }
 0x2a5   : > { %v1008_v8 = vpop.permute.xlu1 %1007  ;;  %2199 = vmatmul.mubr.msk.f32.gmra.mxu1 %vm535_vm5, %v2706_v59  ;;  %v768_v9 = vpop.permute.xlu0 %767 }
 0x2a6   : > { %2222 = vmatpush3.xpose.msk.msra.mxu1 %vm535_vm5, %v772_v3  ;;  %2201 = vmatprep.mubr.msk.f32.mxu1 %vm2542_vm4, %v2541_v25 }
 0x2a7   : > { %2223 = vmatprep.subr.mxu1 %v2541_v25 }
 0x2a9   : > { %v1006_v10 = vpop.permute.xlu1 %1005  ;;  %2202 = vmatmul.mubr.msk.f32.gmra.mxu1 %vm535_vm5, %v2709_v61  ;;  %v1000_v11 = vpop.permute.xlu0 %999 }
 0x2aa   : > { %2224 = vmatpush3.xpose.msk.msra.mxu1 %vm535_vm5, %v770_v4  ;;  %2225 = vmatprep.mubr.msk.f32.mxu1 %vm2542_vm4, %v2541_v25 }
 0x2ab   : > { %2249 = vmatprep.subr.mxu1 %v2541_v25 }
 0x2ad   : > { %v1002_v12 = vpop.permute.xlu1 %1001  ;;  %2226 = vmatmul.mubr.msk.f32.vlgmr.msra.gmra.mxu1 %vm535_vm5, %v764_v5  ;;  %v1004_v13 = vpop.permute.xlu0 %1003 }
 0x2ae   : > { %2250 = vmatpush3.xpose.msk.msra.mxu1 %vm535_vm5, %v1010_v6  ;;  %2228 = vmatprep.mubr.msk.f32.mxu1 %vm2542_vm4, %v2541_v25 }
 0x2af   : > { %2251 = vmatprep.subr.mxu1 %v2541_v25 }
 0x2b1   : > { %v666_v14 = vpop.permute.xlu1 %665  ;;  %2229 = vmatmul.mubr.msk.f32.gmra.mxu1 %vm535_vm5, %v766_v7  ;;  %v668_v15 = vpop.permute.xlu0 %667 }
 0x2b2   : > { %2205 = vmatpush3.msk.msra.mxu0 %vm680_vm6, %v668_v15  ;;  %2252 = vmatpush3.xpose.msk.msra.mxu1 %vm535_vm5, %v1008_v8 }
 0x2b3   : > { %2206 = vmatprep.subr.mxu0 %v2541_v25  ;;  %2231 = vmatprep.mubr.msk.f32.mxu1 %vm2542_vm4, %v2541_v25 }
 0x2b4   : > { %2207 = vmatpush3.msra.mxu0 %v666_v14  ;;  %2253 = vmatprep.subr.mxu1 %v2541_v25 }
 0x2b5   : > { %v664_v16 = vpop.permute.xlu1 %663  ;;  %2208 = vmatprep.subr.mxu0 %v2541_v25  ;;  %2232 = vmatmul.mubr.msk.f32.gmra.mxu1 %vm535_vm5, %v768_v9  ;;  %v2805_v48 = vpop.permute.xlu0 %904 }
 0x2b6   : > { %2209 = vmatpush3.msra.mxu0 %v664_v16  ;;  %2254 = vmatpush3.xpose.msk.msra.mxu1 %vm535_vm5, %v1006_v10 }
 0x2b7   : > { %2255 = vmatprep.mubr.msk.f32.mxu1 %vm2542_vm4, %v2541_v25  ;;  %2234 = vmatprep.subr.mxu0 %v2541_v25 }
 0x2b8   : > { %2368 = vmatprep.subr.mxu1 %v2541_v25 }
 0x2b9   : > { %2256 = vmatmul.mubr.msk.f32.vlgmr.msra.gmra.mxu1 %vm535_vm5, %v1000_v11  ;;  %v2803_v47 = vpop.permute.xlu1 %902 }
 0x2ba   : > { %2258 = vmatprep.mubr.msk.f32.mxu1 %vm2542_vm4, %v2541_v25 }
 0x2bd   : > { %2259 = vmatmul.mubr.msk.f32.gmra.mxu1 %vm535_vm5, %v1002_v12 }
 0x2be   : > { %2261 = vmatprep.mubr.msk.f32.mxu1 %vm2542_vm4, %v2541_v25 }
 0x2c1   : > { %2262 = vmatmul.mubr.msk.f32.gmra.mxu1 %vm535_vm5, %v1004_v13 }
 0x2c2   : > { %2288 = vmatprep.mubr.msk.f32.mxu1 %vm2542_vm4, %v2541_v25 }
 0x361   : > { %v614_v17 = vpop.f32.mrf.mxu1 }
 0x362   : > { %v629_v18 = vsel %vm628_vm7, %v614_v17, -inf }
 0x363   : > { %630 = vmax.xlane.f32.xlu1 %v629_v18  ;;  %v2197_v19 = vpop.f32.mrf.mxu1 }
 0x365   : > { %v619_v20 = vpop.f32.mrf.mxu1 }
 0x366   : > { %v632_v21 = vsel %vm628_vm7, %v619_v20, -inf }
 0x367   : > { %633 = vmax.xlane.f32.xlu0 %v632_v21  ;;  %v2200_v22 = vpop.f32.mrf.mxu1 }
 0x369   : > { %v624_v23 = vpop.f32.mrf.mxu1 }
 0x36a   : > { %v636_v24 = vsel %vm635_vm8, %v624_v23, -inf }
 0x36b   : > { %637 = vmax.xlane.f32.xlu0 %v636_v24  ;;  %v2203_v26 = vpop.f32.mrf.mxu1 }
 0x36d   : > { %v853_v27 = vpop.f32.mrf.mxu1 }
 0x36e   : > { %v867_v28 = vsel %vm628_vm7, %v853_v27, -inf }
 0x36f   : > { %868 = vmax.xlane.f32.xlu0 %v867_v28  ;;  %v2227_v29 = vpop.f32.mrf.mxu1 }
 0x371   : > { %v858_v30 = vpop.f32.mrf.mxu1 }
 0x372   : > { %v870_v31 = vsel %vm628_vm7, %v858_v30, -inf }
 0x373   : > { %871 = vmax.xlane.f32.xlu1 %v870_v31  ;;  %v2230_v32 = vpop.f32.mrf.mxu1 }
 0x375   : > { %v2789_v33 = vpop.f32.mrf.mxu1 }
 0x376   : > { %v873_v34 = vsel %vm635_vm8, %v2789_v33, -inf }
 0x377   : > { %874 = vmax.xlane.f32.xlu0 %v873_v34  ;;  %v2233_v35 = vpop.f32.mrf.mxu1 }
 0x379   : > { %v1089_v36 = vpop.f32.mrf.mxu1 }
 0x37a   : > { %v1103_v37 = vsel %vm628_vm7, %v1089_v36, -inf }
 0x37b   : > { %1104 = vmax.xlane.f32.xlu1 %v1103_v37  ;;  %v2257_v38 = vpop.f32.mrf.mxu1 }
 0x37d   : > { %v1094_v40 = vpop.f32.mrf.mxu1 }
 0x37e   : > { %v1106_v42 = vsel %vm628_vm7, %v1094_v40, -inf }
 0x37f   : > { %1107 = vmax.xlane.f32.xlu0 %v1106_v42  ;;  %v2260_v43 = vpop.f32.mrf.mxu1 }
 0x381   : > { %v2795_v44 = vpop.f32.mrf.mxu1 }
 0x382   : > { %v1109_v46 = vsel %vm635_vm8, %v2795_v44, -inf }
 0x383   : > { %v2263_v45 = vpop.f32.mrf.mxu1 }
 0x38c   : > { %1140 = vrot.lane.b32.xlu1 %v2709_v61, %s2550_s10 }
 0x395   : > { %900 = vrot.lane.b32.xlu0 %v2704_v57, %s2549_s7 }
 0x3b0   : > { %1110 = vmax.xlane.f32.xlu1 %v1109_v46 }
 0x3ec   : > { %v631_v49 = vpop.xlane.xlu1 %630 }
 0x3ed   : > { %v639_v50 = vsub.f32 %v614_v17, %v631_v49 }
 0x3ef   : > { %v642_v51 = vmul.f32 1.442695, %v639_v50 }
 0x3f0   : > { %v634_v52 = vpop.xlane.xlu0 %633 }
 0x3f1   : > { %2437 = vpow2.f32 %v642_v51  ;;  %v640_v53 = vsub.f32 %v619_v20, %v634_v52 }
 0x3f3   : > { %v644_v54 = vmul.f32 1.442695, %v640_v53 }
 0x3f4   : > { %v638_v55 = vpop.xlane.xlu0 %637 }
 0x3f5   : > { %2439 = vpow2.f32 %v644_v54  ;;  %v641_v56 = vsub.f32 %v624_v23, %v638_v55 }
 0x3f7   : > { %v646_v58 = vmul.f32 1.442695, %v641_v56 }
 0x3f8   : > { %v869_v60 = vpop.xlane.xlu0 %868 }
 0x3f9   : > { %2441 = vpow2.f32 %v646_v58  ;;  %v876_v62 = vsub.f32 %v853_v27, %v869_v60 }
 0x3fb   : > { %v879_v63 = vmul.f32 1.442695, %v876_v62 }
 0x3fc   : > { %v872_v0 = vpop.xlane.xlu1 %871 }
 0x3fd   : > { %2443 = vpow2.f32 %v879_v63  ;;  %v877_v1 = vsub.f32 %v858_v30, %v872_v0 }
 0x3fe   : > { %v2807_v2 = vpop.eup %2437 }
 0x3ff   : > { %v881_v3 = vmul.f32 1.442695, %v877_v1  ;;  %v648_v4 = vsel %vm628_vm7, %v2807_v2, 0.0 }
 0x400   : > { %649 = vadd.xlane.f32.xlu0 %v648_v4  ;;  %v875_v13 = vpop.xlane.xlu0 %874 }
 0x401   : > { %2445 = vpow2.f32 %v881_v3  ;;  %v878_v14 = vsub.f32 %v2789_v33, %v875_v13 }
 0x402   : > { %v2811_v5 = vpop.eup %2439 }
 0x403   : > { %v651_v6 = vsel %vm628_vm7, %v2811_v5, 0.0  ;;  %v883_v18 = vmul.f32 1.442695, %v878_v14 }
 0x404   : > { %652 = vadd.xlane.f32.xlu1 %v651_v6  ;;  %v1105_v15 = vpop.xlane.xlu1 %1104 }
 0x405   : > { %v1112_v17 = vsub.f32 %v1089_v36, %v1105_v15  ;;  %2447 = vpow2.f32 %v883_v18 }
 0x406   : > { %v2815_v7 = vpop.eup %2441 }
 0x407   : > { %v654_v8 = vsel %vm635_vm8, %v2815_v7, 0.0  ;;  %v1115_v20 = vmul.f32 1.442695, %v1112_v17 }
 0x408   : > { %655 = vadd.xlane.f32.xlu0 %v654_v8  ;;  %v1108_v16 = vpop.xlane.xlu0 %1107  ;;  %v1141_v29 = vpop.permute.xlu1 %1140 }
 0x409   : > { %v1113_v19 = vsub.f32 %v1094_v40, %v1108_v16  ;;  %2449 = vpow2.f32 %v1115_v20 }
 0x40a   : > { %v2819_v9 = vpop.eup %2443 }
 0x40b   : > { %v885_v10 = vsel %vm628_vm7, %v2819_v9, 0.0  ;;  %v1117_v21 = vmul.f32 1.442695, %v1113_v19 }
 0x40c   : > { %886 = vadd.xlane.f32.xlu1 %v885_v10  ;;  %v901_v35 = vpop.permute.xlu0 %900 }
 0x40d   : > { %2451 = vpow2.f32 %v1117_v21 }
 0x40e   : > { %v2823_v11 = vpop.eup %2445 }
 0x40f   : > { %v888_v12 = vsel %vm628_vm7, %v2823_v11, 0.0 }
 0x410   : > { %889 = vadd.xlane.f32.xlu0 %v888_v12 }
 0x412   : > { %v2832_v22 = vpop.eup %2447 }
 0x413   : > { %v891_v24 = vsel %vm635_vm8, %v2832_v22, 0.0 }
 0x416   : > { %v2834_v23 = vpop.eup %2449 }
 0x417   : > { %v1121_v27 = vsel %vm628_vm7, %v2834_v23, 0.0 }
 0x41a   : > { %v2838_v26 = vpop.eup %2451 }
 0x41b   : > { %v1124_v28 = vsel %vm628_vm7, %v2838_v26, 0.0 }
 0x41d   : > { %1136 = vrot.lane.b32.xlu1 %v2704_v57, %s2550_s10 }
 0x426   : > { %1138 = vrot.lane.b32.xlu0 %v2706_v59, %s2550_s10 }
 0x439   : > { %v1111_v30 = vpop.xlane.xlu1 %1110 }
 0x43a   : > { %v1114_v31 = vsub.f32 %v2795_v44, %v1111_v30 }
 0x43c   : > { %v1119_v32 = vmul.f32 1.442695, %v1114_v31 }
 0x43e   : > { %2453 = vpow2.f32 %v1119_v32 }
 0x441   : > { %892 = vadd.xlane.f32.xlu1 %v891_v24 }
 0x445   : > { %1122 = vadd.xlane.f32.xlu1 %v1121_v27  ;;  %1125 = vadd.xlane.f32.xlu0 %v1124_v28 }
 0x44b   : > { %v2849_v33 = vpop.eup %2453 }
 0x44c   : > { %v1127_v34 = vsel %vm635_vm8, %v2849_v33, 0.0 }
 0x456   : > { %1243 = vrot.lane.b32.xlu1 %v2706_v59, %s2551_s13 }
 0x45b   : > { %1245 = vrot.lane.b32.xlu0 %v2709_v61, %s2551_s13 }
 0x45f   : > { %1241 = vrot.lane.b32.xlu0 %v2704_v57, %s2551_s13 }
 0x463   : > { %1237 = vrot.lane.b32.xlu0 %v2706_v59, %s2552_s17 }
 0x47a   : > { %1128 = vadd.xlane.f32.xlu1 %v1127_v34 }
 0x489   : > { %v650_v36 = vpop.xlane.xlu0 %649 }
 0x48a   : > { %2455 = vrcp.f32 %v650_v36 }
 0x48b   : > { %1235 = vrot.lane.b32.xlu1 %v2704_v57, %s2552_s17 }
 0x48d   : > { %v653_v37 = vpop.xlane.xlu1 %652 }
 0x48e   : > { %2457 = vrcp.f32 %v653_v37 }
 0x48f   : > { %1239 = vrot.lane.b32.xlu1 %v2709_v61, %s2552_s17 }
 0x491   : > { %v656_v38 = vpop.xlane.xlu0 %655 }
 0x492   : > { %2459 = vrcp.f32 %v656_v38 }
 0x495   : > { %v887_v40 = vpop.xlane.xlu1 %886 }
 0x496   : > { %2461 = vrcp.f32 %v887_v40 }
 0x497   : > { %v2456_v42 = vpop.eup %2455 }
 0x498   : > { %v660_v43 = vmul.f32 %v2456_v42, %v2807_v2 }
 0x499   : > { %v890_v44 = vpop.xlane.xlu0 %889  ;;  %v1137_v54 = vpop.permute.xlu1 %1136 }
 0x49a   : > { %2463 = vrcp.f32 %v890_v44  ;;  %2211 = vmatmul.mubr.msk.f32.vlgmr.msra.gmra.mxu0 %vm628_vm7, %v660_v43 }
 0x49b   : > { %v2458_v45 = vpop.eup %2457  ;;  %2235 = vmatpush3.msk.msra.mxu0 %vm680_vm6, %v2805_v48  ;;  %2213 = vmatprep.mubr.msk.f32.mxu0 %vm2542_vm4, %v2541_v25 }
 0x49c   : > { %2236 = vmatprep.subr.mxu0 %v2541_v25  ;;  %v661_v46 = vmul.f32 %v2458_v45, %v2811_v5 }
 0x49d   : > { %2237 = vmatpush3.msra.mxu0 %v2803_v47  ;;  %v1139_v52 = vpop.permute.xlu0 %1138 }
 0x49e   : > { %2238 = vmatprep.subr.mxu0 %v2541_v25  ;;  %2214 = vmatmul.mubr.msk.f32.gmra.mxu0 %vm628_vm7, %v661_v46 }
 0x49f   : > { %v2460_v49 = vpop.eup %2459  ;;  %2239 = vmatpush3.msra.mxu0 %v901_v35  ;;  %2216 = vmatprep.mubr.msk.f32.mxu0 %vm2542_vm4, %v2541_v25 }
 0x4a0   : > { %v662_v48 = vmul.f32 %v2460_v49, %v2815_v7  ;;  %2264 = vmatprep.subr.mxu0 %v2541_v25 }
 0x4a2   : > { %2217 = vmatmul.mubr.msk.f32.gmra.mxu0 %vm628_vm7, %v662_v48 }
 0x4a3   : > { %v2462_v50 = vpop.eup %2461  ;;  %2240 = vmatprep.mubr.msk.f32.mxu0 %vm2542_vm4, %v2541_v25 }
 0x4a4   : > { %v897_v47 = vmul.f32 %v2462_v50, %v2819_v9 }
 0x4a6   : > { %2241 = vmatmul.mubr.msk.f32.vlgmr.msra.gmra.mxu0 %vm628_vm7, %v897_v47 }
 0x4a7   : > { %v2464_v51 = vpop.eup %2463  ;;  %2265 = vmatpush3.msk.msra.mxu0 %vm680_vm6, %v1141_v29  ;;  %2243 = vmatprep.mubr.msk.f32.mxu0 %vm2542_vm4, %v2541_v25 }
 0x4a8   : > { %2266 = vmatprep.subr.mxu0 %v2541_v25  ;;  %v898_v53 = vmul.f32 %v2464_v51, %v2823_v11 }
 0x4a9   : > { %2267 = vmatpush3.msra.mxu0 %v1139_v52 }
 0x4aa   : > { %2268 = vmatprep.subr.mxu0 %v2541_v25  ;;  %2244 = vmatmul.mubr.msk.f32.gmra.mxu0 %vm628_vm7, %v898_v53 }
 0x4ab   : > { %2269 = vmatpush3.msra.mxu0 %v1137_v54  ;;  %2246 = vmatprep.mubr.msk.f32.mxu0 %vm2542_vm4, %v2541_v25 }
 0x4ac   : > { %2279 = vmatprep.subr.mxu0 %v2541_v25 }
 0x4ca   : > { %v893_v55 = vpop.xlane.xlu1 %892 }
 0x4cb   : > { %2465 = vrcp.f32 %v893_v55 }
 0x4ce   : > { %v1123_v56 = vpop.xlane.xlu1 %1122  ;;  %v1126_v58 = vpop.xlane.xlu0 %1125 }
 0x4cf   : > { %2467 = vrcp.f32 %v1123_v56 }
 0x4d0   : > { %2469 = vrcp.f32 %v1126_v58 }
 0x4d2   : > { %v1246_v60 = vpop.permute.xlu0 %1245  ;;  %v1244_v62 = vpop.permute.xlu1 %1243 }
 0x4d3   : > { %2371 = vmatpush3.xpose.msk.msra.mxu1 %vm535_vm5, %v1246_v60 }
 0x4d4   : > { %2369 = vmatprep.subr.mxu1 %v2541_v25 }
 0x4d6   : > { %v1242_v63 = vpop.permute.xlu0 %1241 }
 0x4d7   : > { %2372 = vmatpush3.xpose.msk.msra.mxu1 %vm535_vm5, %v1244_v62 }
 0x4d8   : > { %v2466_v0 = vpop.eup %2465  ;;  %2370 = vmatprep.subr.mxu1 %v2541_v25 }
 0x4d9   : > { %v899_v1 = vmul.f32 %v2466_v0, %v2832_v22 }
 0x4da   : > { %v1238_v4 = vpop.permute.xlu0 %1237 }
 0x4db   : > { %2247 = vmatmul.mubr.msk.f32.gmra.mxu0 %vm628_vm7, %v899_v1  ;;  %2373 = vmatpush3.xpose.msk.msra.mxu1 %vm535_vm5, %v1242_v63 }
 0x4dc   : > { %v2468_v2 = vpop.eup %2467  ;;  %2270 = vmatprep.mubr.msk.f32.mxu0 %vm2542_vm4, %v2541_v25  ;;  %2309 = vmatprep.subr.mxu1 %v2541_v25 }
 0x4dd   : > { %v1133_v3 = vmul.f32 %v2468_v2, %v2834_v23  ;;  %v2470_v5 = vpop.eup %2469 }
 0x4de   : > { %2289 = vmatmul.mubr.msk.f32.vlgmr.msra.gmra.mxu1 %vm535_vm5, %v1238_v4  ;;  %v1134_v6 = vmul.f32 %v2470_v5, %v2838_v26  ;;  %v1521_v5 = vld [vmem:[%s2637_s16 + $0x18] sm:$0xff] }
 0x4df   : > { %2271 = vmatmul.mubr.msk.f32.vlgmr.msra.gmra.mxu0 %vm628_vm7, %v1133_v3  ;;  %2291 = vmatprep.mubr.msk.f32.mxu1 %vm2542_vm4, %v2541_v25 }
 0x4e0   : > { %2280 = vmatpush3.xpose.msk.msra.mxu0 %vm535_vm5, %v1246_v60  ;;  %2273 = vmatprep.mubr.msk.f32.mxu0 %vm2542_vm4, %v2541_v25 }
 0x4e1   : > { %2281 = vmatprep.subr.mxu0 %v2541_v25  ;;  %2310 = vmatpush3.msra.mxu1 %v1521_v5 }
 0x4e2   : > { %2311 = vmatprep.subr.mxu1 %v2541_v25 }
 0x4e3   : > { %2274 = vmatmul.mubr.msk.f32.gmra.mxu0 %vm628_vm7, %v1134_v6  ;;  %v1520_v6 = vld [vmem:[%s2637_s16 + $0x10] sm:$0xff] }
 0x4e4   : > { %2282 = vmatpush3.xpose.msk.msra.mxu0 %vm535_vm5, %v1244_v62  ;;  %2276 = vmatprep.mubr.msk.f32.mxu0 %vm2542_vm4, %v2541_v25 }
 0x4e5   : > { %2283 = vmatprep.subr.mxu0 %v2541_v25  ;;  %2312 = vmatpush3.msra.mxu1 %v1520_v6  ;;  %v1674_v6 = vld [vmem:[%s2647_s8 + $0x18] sm:$0xff] }
 0x4e6   : > { %2313 = vmatprep.subr.mxu1 %v2541_v25 }
 0x4e8   : > { %2284 = vmatpush3.xpose.msk.msra.mxu0 %vm535_vm5, %v1242_v63 }
 0x4e9   : > { %2294 = vmatprep.subr.mxu0 %v2541_v25 }
 0x503   : > { %v1129_v7 = vpop.xlane.xlu1 %1128 }
 0x504   : > { %2471 = vrcp.f32 %v1129_v7  ;;  %v1519_v7 = vld [vmem:[%s2637_s16 + $0x8] sm:$0xff] }
 0x505   : > { %2314 = vmatpush3.msra.mxu1 %v1519_v7  ;;  %v1673_v7 = vld [vmem:[%s2647_s8 + $0x10] sm:$0xff] }
 0x506   : > { %2315 = vmatprep.subr.mxu1 %v2541_v25 }
 0x507   : > { %v1236_v8 = vpop.permute.xlu1 %1235 }
 0x50b   : > { %v1240_v9 = vpop.permute.xlu1 %1239 }
 0x50c   : > { %2292 = vmatmul.mubr.msk.f32.gmra.mxu1 %vm535_vm5, %v1240_v9 }
 0x50d   : > { %2317 = vmatprep.mubr.msk.f32.mxu1 %vm2542_vm4, %v2541_v25 }
 0x511   : > { %v2472_v10 = vpop.eup %2471 }
 0x512   : > { %v1135_v11 = vmul.f32 %v2472_v10, %v2849_v33 }
 0x514   : > { %2277 = vmatmul.mubr.msk.f32.gmra.mxu0 %vm628_vm7, %v1135_v11 }
 0x515   : > { %2285 = vmatprep.mubr.msk.f32.mxu0 %vm2542_vm4, %v2541_v25 }
 0x518   : > { %2286 = vmatmul.mubr.msk.f32.vlgmr.msra.gmra.mxu0 %vm535_vm5, %v1236_v8  ;;  %v1518_v8 = vld [vmem:[%s2637_s16] sm:$0xff] }
 0x519   : > { %2300 = vmatprep.mubr.msk.f32.mxu0 %vm2542_vm4, %v2541_v25  ;;  %2316 = vmatpush3.msra.mxu1 %v1518_v8  ;;  %v1672_v8 = vld [vmem:[%s2647_s8 + $0x8] sm:$0xff] }
 0x51a   : > { %2343 = vmatprep.subr.mxu1 %v2541_v25 }
 0x55a   : > { %v2922_v12 = vpop.f32.mrf.mxu0 }
 0x55c   : > { %v2212_v13 = vpop.f32.mrf.mxu0 }
 0x55e   : > { %v2924_v14 = vpop.f32.mrf.mxu0 }
 0x560   : > { %v2215_v15 = vpop.f32.mrf.mxu0 }
 0x562   : > { %v2926_v16 = vpop.f32.mrf.mxu0 }
 0x564   : > { %v2218_v17 = vpop.f32.mrf.mxu0 }
 0x566   : > { %v985_v18 = vpop.f32.mrf.mxu0 }
 0x568   : > { %v2242_v19 = vpop.f32.mrf.mxu0 }
 0x56a   : > { %v990_v20 = vpop.f32.mrf.mxu0 }
 0x56c   : > { %v2245_v21 = vpop.f32.mrf.mxu0 }
 0x59b   : > { %v2928_v22 = vpop.f32.mrf.mxu0 }
 0x59d   : > { %v2248_v23 = vpop.f32.mrf.mxu0 }
 0x59e   : > { %v1330_v24 = vpop.f32.mrf.mxu1 }
 0x59f   : > { %v1221_v26 = vpop.f32.mrf.mxu0  ;;  %v1342_v27 = vsel %vm628_vm7, %v1330_v24, -inf }
 0x5a0   : > { %1343 = vmax.xlane.f32.xlu1 %v1342_v27  ;;  %v2290_v28 = vpop.f32.mrf.mxu1 }
 0x5a1   : > { %v2272_v29 = vpop.f32.mrf.mxu0 }
 0x5a3   : > { %v1226_v30 = vpop.f32.mrf.mxu0 }
 0x5a5   : > { %v2275_v31 = vpop.f32.mrf.mxu0 }
 0x5cc   : > { %v1335_v32 = vpop.f32.mrf.mxu1 }
 0x5cd   : > { %v1345_v40 = vsel %vm635_vm8, %v1335_v32, -inf }
 0x5ce   : > { %v2293_v33 = vpop.f32.mrf.mxu1 }
 0x5d4   : > { %v2931_v34 = vpop.f32.mrf.mxu0 }
 0x5d6   : > { %v2278_v35 = vpop.f32.mrf.mxu0 }
 0x5d7   : > { %v1524_v35 = vsub.s32 2, %v2686_v39 }
 0x5d8   : > { %v1325_v36 = vpop.f32.mrf.mxu0 }
 0x5d9   : > { %v1339_v37 = vsel %vm628_vm7, %v1325_v36, -inf }
 0x5da   : > { %1340 = vmax.xlane.f32.xlu0 %v1339_v37  ;;  %v2287_v38 = vpop.f32.mrf.mxu0 }
 0x5de   : > { %1346 = vmax.xlane.f32.xlu0 %v1345_v40  ;;  %v2497_v40 = vld [vmem:[%s2657_s15] sm:$0xff] }
 0x629   : > { %v1344_v42 = vpop.xlane.xlu1 %1343 }
 0x62a   : > { %v1349_v43 = vsub.f32 %v1330_v24, %v1344_v42 }
 0x62c   : > { %v1353_v44 = vmul.f32 1.442695, %v1349_v43 }
 0x62e   : > { %2473 = vpow2.f32 %v1353_v44 }
 0x63b   : > { %v2474_v45 = vpop.eup %2473 }
 0x63c   : > { %v1360_v46 = vsel %vm628_vm7, %v2474_v45, 0.0 }
 0x63d   : > { %1361 = vadd.xlane.f32.xlu0 %v1360_v46 }
 0x663   : > { %v1341_v49 = vpop.xlane.xlu0 %1340 }
 0x664   : > { %v1348_v48 = vsub.f32 %v1325_v36, %v1341_v49  ;;  %v1525_v36 = vrot.slane %v2690_v41, %v1524_v35  ;;  %v2498_v49 = vld [vmem:[%s2657_s15 + $0x8] sm:$0xff] }
 0x666   : > { %v1351_v50 = vmul.f32 1.442695, %v1348_v48 }
 0x667   : > { %v1347_v47 = vpop.xlane.xlu0 %1346 }
 0x668   : > { %2475 = vpow2.f32 %v1351_v50  ;;  %v1350_v51 = vsub.f32 %v1335_v32, %v1347_v47 }
 0x66a   : > { %v1355_v52 = vmul.f32 1.442695, %v1350_v51 }
 0x66c   : > { %2477 = vpow2.f32 %v1355_v52  ;;  %v2499_v52 = vld [vmem:[%s2657_s15 + $0x10] sm:$0x1] }
 0x675   : > { %v2476_v53 = vpop.eup %2475 }
 0x676   : > { %v1357_v54 = vsel %vm628_vm7, %v2476_v53, 0.0 }
 0x677   : > { %1358 = vadd.xlane.f32.xlu0 %v1357_v54 }
 0x679   : > { %v2478_v55 = vpop.eup %2477 }
 0x67a   : > { %v1363_v56 = vsel %vm635_vm8, %v2478_v55, 0.0 }
 0x67b   : > { %1364 = vadd.xlane.f32.xlu1 %v1363_v56 }
 0x68c   : > { %1374 = vrot.lane.b32.xlu1 %v2706_v59, %s2553_s18 }
 0x68d   : > { %1376 = vrot.lane.b32.xlu0 %v2709_v61, %s2553_s18 }
 0x690   : > { %1372 = vrot.lane.b32.xlu1 %v2704_v57, %s2553_s18 }
 0x691   : > { %1486 = vrot.lane.b32.xlu0 %v1221_v26, %s2554_s20 }
 0x694   : > { %1474 = vrot.lane.b32.xlu1 %v985_v18, %s2555_s22 }
 0x695   : > { %1476 = vrot.lane.b32.xlu0 %v990_v20, %s2555_s22 }
 0x698   : > { %1488 = vrot.lane.b32.xlu1 %v1226_v30, %s2554_s20 }
 0x6c6   : > { %v1362_v58 = vpop.xlane.xlu0 %1361 }
 0x700   : > { %v1359_v60 = vpop.xlane.xlu0 %1358 }
 0x701   : > { %2479 = vrcp.f32 %v1359_v60 }
 0x702   : > { %2481 = vrcp.f32 %v1362_v58 }
 0x704   : > { %v1365_v62 = vpop.xlane.xlu1 %1364  ;;  %v1377_v59 = vpop.permute.xlu0 %1376 }
 0x705   : > { %2295 = vmatpush3.msk.msra.mxu0 %vm680_vm6, %v1377_v59  ;;  %2483 = vrcp.f32 %v1365_v62 }
 0x706   : > { %2296 = vmatprep.subr.mxu0 %v2541_v25 }
 0x708   : > { %v1375_v57 = vpop.permute.xlu1 %1374  ;;  %v1487_v19 = vpop.permute.xlu0 %1486 }
 0x709   : > { %2297 = vmatpush3.msra.mxu0 %v1375_v57 }
 0x70a   : > { %2298 = vmatprep.subr.mxu0 %v2541_v25 }
 0x70c   : > { %v1373_v61 = vpop.permute.xlu1 %1372  ;;  %v1477_v23 = vpop.permute.xlu0 %1476 }
 0x70d   : > { %2299 = vmatpush3.msra.mxu0 %v1373_v61  ;;  %v1508_v27 = vsel %vm535_vm5, %v2924_v14, %v1477_v23  ;;  %v1659_v23 = vsub.s32 3, %v2686_v39 }
 0x70e   : > { %v2480_v63 = vpop.eup %2479  ;;  %2326 = vmatprep.subr.mxu0 %v2541_v25 }
 0x70f   : > { %v1369_v0 = vmul.f32 %v2480_v63, %v2476_v53  ;;  %v2482_v1 = vpop.eup %2481 }
 0x710   : > { %v1370_v2 = vmul.f32 %v2482_v1, %v2474_v45  ;;  %v1475_v18 = vpop.permute.xlu1 %1474 }
 0x711   : > { %2301 = vmatmul.mubr.msk.f32.vlgmr.msra.gmra.mxu0 %vm628_vm7, %v1369_v0  ;;  %v1507_v21 = vsel %vm535_vm5, %v2922_v12, %v1475_v18 }
 0x712   : > { %2303 = vmatprep.mubr.msk.f32.mxu0 %vm2542_vm4, %v2541_v25  ;;  %v2484_v3 = vpop.eup %2483  ;;  %v1511_v24 = vsel %vm1510_vm9, %v1507_v21, %v1487_v19  ;;  %2327 = vmatpush3.msra.mxu0 %v1674_v6 }
 0x713   : > { %v1371_v4 = vmul.f32 %v2484_v3, %v2478_v55  ;;  %2328 = vmatprep.subr.mxu0 %v2541_v25 }
 0x714   : > { %v1489_v20 = vpop.permute.xlu1 %1488  ;;  %2329 = vmatpush3.msra.mxu0 %v1673_v7 }
 0x715   : > { %2304 = vmatmul.mubr.msk.f32.gmra.mxu0 %vm628_vm7, %v1370_v2  ;;  %v1512_v28 = vsel %vm1510_vm9, %v1508_v27, %v1489_v20  ;;  %2330 = vmatprep.subr.mxu0 %v2541_v25 }
 0x716   : > { %2306 = vmatprep.mubr.msk.f32.mxu0 %vm2542_vm4, %v2541_v25  ;;  %2331 = vmatpush3.msra.mxu0 %v1672_v8 }
 0x717   : > { %2332 = vmatprep.subr.mxu0 %v2541_v25 }
 0x719   : > { %2307 = vmatmul.mubr.msk.f32.gmra.mxu0 %vm628_vm7, %v1371_v4 }
 0x71a   : > { %2334 = vmatprep.mubr.msk.f32.mxu0 %vm2542_vm4, %v2541_v25 }
 0x7d1   : > { %v1457_v9 = vpop.f32.mrf.mxu0 }
 0x7d2   : > { %1498 = vrot.lane.b32.xlu1 %v1457_v9, %s2556_s9  ;;  %v1671_v9 = vld [vmem:[%s2647_s8] sm:$0xff] }
 0x7d3   : > { %v2302_v10 = vpop.f32.mrf.mxu0  ;;  %2333 = vmatpush3.msra.mxu0 %v1671_v9 }
 0x7d5   : > { %v1462_v11 = vpop.f32.mrf.mxu0 }
 0x7d6   : > { %1478 = vrot.lane.b32.xlu1 %v2928_v22, %s2555_s22  ;;  %1500 = vrot.lane.b32.xlu0 %v1462_v11, %s2556_s9 }
 0x7d7   : > { %v2305_v13 = vpop.f32.mrf.mxu0 }
 0x7d9   : > { %v1467_v15 = vpop.f32.mrf.mxu0 }
 0x7da   : > { %1490 = vrot.lane.b32.xlu0 %v2931_v34, %s2554_s20  ;;  %1502 = vrot.lane.b32.xlu1 %v1467_v15, %s2556_s9 }
 0x7db   : > { %v2308_v17 = vpop.f32.mrf.mxu0 }
 0x844   : > { %v1499_v22 = vpop.permute.xlu1 %1498 }
 0x845   : > { %v1515_v26 = vsel %vm1514_vm10, %v1511_v24, %v1499_v22  ;;  %v1666_v24 = vsub.s32 4, %v2686_v39  ;;  %v3024_v22 = vld [vmem:[%s2642_s19] sm:$0xff] }
 0x846   : > { %2318 = vmatmul.mubr.msk.f32.vlgmr.msra.gmra.mxu1 %vm377_vm2, %v1515_v26  ;;  %v1660_v26 = vrot.slane %v3024_v22, %v1659_v23 }
 0x847   : > { %2320 = vmatprep.mubr.msk.f32.mxu1 %vm2542_vm4, %v2541_v25 }
 0x848   : > { %v1479_v29 = vpop.permute.xlu1 %1478  ;;  %v1501_v12 = vpop.permute.xlu0 %1500 }
 0x849   : > { %v1516_v30 = vsel %vm1514_vm10, %v1512_v28, %v1501_v12  ;;  %v1509_v31 = vsel %vm535_vm5, %v2926_v16, %v1479_v29  ;;  %v1667_v29 = vrot.slane %v3024_v22, %v1666_v24 }
 0x84a   : > { %2321 = vmatmul.mubr.msk.f32.gmra.mxu1 %vm377_vm2, %v1516_v30 }
 0x84b   : > { %2323 = vmatprep.mubr.msk.f32.mxu1 %vm2542_vm4, %v2541_v25 }
 0x84c   : > { %v1491_v32 = vpop.permute.xlu0 %1490  ;;  %v1503_v14 = vpop.permute.xlu1 %1502 }
 0x84d   : > { %v1513_v33 = vsel %vm1510_vm9, %v1509_v31, %v1491_v32 }
 0x84e   : > { %v1517_v34 = vsel %vm1514_vm10, %v1513_v33, %v1503_v14 }
 0x84f   : > { %2324 = vmatmul.mubr.msk.f32.gmra.mxu1 %vm377_vm2, %v1517_v34 }
 0x850   : > { %2359 = vmatprep.mubr.msk.f32.mxu1 %vm2542_vm4, %v2541_v25 }
 0x906   : > { %v1601_v37 = vpop.f32.mrf.mxu1 }
 0x907   : > { %v1602_v38 = vadd.f32 %v1601_v37, %v1525_v36 }
 0x908   : > { %v2319_v16 = vpop.f32.mrf.mxu1 }
 0x909   : > { %v2994_v42 = vadd.f32 %v2497_v40, %v1602_v38  ;;  %v1790_v38 = vld [vmem:[%s2652_s12 + $0x38] sm:$0xff]  ;;  %v1789_v16 = vld [vmem:[%s2652_s12 + $0x30] sm:$0xff]  ;;  %v1788_v40 = vld [vmem:[%s2652_s12 + $0x28] sm:$0xff] }
 0x90a   : > { %v1606_v43 = vpop.f32.mrf.mxu1  ;;  %2344 = vmatpush3.msra.mxu1 %v1790_v38 }
 0x90b   : > { %v1607_v44 = vadd.f32 %v1606_v43, %v1525_v36  ;;  %v1618_v45 = vsel %vm377_vm2, %v2994_v42, 0.0  ;;  %2345 = vmatprep.subr.mxu1 %v2541_v25  ;;  %v1787_v43 = vld [vmem:[%s2652_s12 + $0x20] sm:$0xff] }
 0x90c   : > { %1619 = vadd.xlane.f32.xlu0 %v1618_v45  ;;  %v2322_v46 = vpop.f32.mrf.mxu1  ;;  %2346 = vmatpush3.msra.mxu1 %v1789_v16  ;;  %v1785_v45 = vld [vmem:[%s2652_s12 + $0x10] sm:$0xff] }
 0x90d   : > { %v2999_v48 = vadd.f32 %v2498_v49, %v1607_v44  ;;  %2347 = vmatprep.subr.mxu1 %v2541_v25  ;;  %v1786_v44 = vld [vmem:[%s2652_s12 + $0x18] sm:$0xff]  ;;  %v1784_v46 = vld [vmem:[%s2652_s12 + $0x8] sm:$0xff]  ;;  %v1783_v49 = vld [vmem:[%s2652_s12] sm:$0xff] }
 0x90e   : > { %2348 = vmatpush3.msra.mxu1 %v1788_v40 }
 0x90f   : > { %v1611_v50 = vpop.f32.mrf.mxu1  ;;  %v1621_v41 = vsel %vm377_vm2, %v2999_v48, 0.0  ;;  %2349 = vmatprep.subr.mxu1 %v2541_v25 }
 0x910   : > { %v1612_v47 = vadd.f32 %v1611_v50, %v1525_v36  ;;  %1622 = vadd.xlane.f32.xlu1 %v1621_v41  ;;  %2350 = vmatpush3.msra.mxu1 %v1787_v43  ;;  %v1677_v50 = vsub.s32 5, %v2686_v39 }
 0x911   : > { %v2325_v51 = vpop.f32.mrf.mxu1  ;;  %2351 = vmatprep.subr.mxu1 %v2541_v25 }
 0x912   : > { %v3004_v53 = vadd.f32 %v2499_v52, %v1612_v47  ;;  %2352 = vmatpush3.msra.mxu1 %v1786_v44  ;;  %v1678_v41 = vrot.slane %v3024_v22, %v1677_v50 }
 0x913   : > { %2353 = vmatprep.subr.mxu1 %v2541_v25 }
 0x914   : > { %v1624_v54 = vsel %vm384_vm3, %v3004_v53, 0.0  ;;  %2354 = vmatpush3.msra.mxu1 %v1785_v45 }
 0x915   : > { %1625 = vadd.xlane.f32.xlu0 %v1624_v54  ;;  %2355 = vmatprep.subr.mxu1 %v2541_v25 }
 0x916   : > { %2356 = vmatpush3.msra.mxu1 %v1784_v46 }
 0x917   : > { %2357 = vmatprep.subr.mxu1 %v2541_v25 }
 0x918   : > { %2358 = vmatpush3.msra.mxu1 %v1783_v49 }
 0x995   : > { %v1620_v55 = vpop.xlane.xlu0 %1619 }
 0x996   : > { %v1627_v56 = vmul.f32 0.03125, %v1620_v55 }
 0x998   : > { %v1630_v58 = vsub.f32 %v2994_v42, %v1627_v56 }
 0x999   : > { %v1623_v60 = vpop.xlane.xlu1 %1622 }
 0x99a   : > { %v1628_v62 = vmul.f32 0.03125, %v1623_v60  ;;  %v1633_v59 = vmul.f32 %v1630_v58, %v1630_v58 }
 0x99c   : > { %v1631_v57 = vsub.f32 %v2999_v48, %v1628_v62  ;;  %v1636_v61 = vsel %vm377_vm2, %v1633_v59, 0.0 }
 0x99d   : > { %1637 = vadd.xlane.f32.xlu0 %v1636_v61 }
 0x99e   : > { %v1626_v63 = vpop.xlane.xlu0 %1625  ;;  %v1634_v0 = vmul.f32 %v1631_v57, %v1631_v57 }
 0x99f   : > { %v1629_v1 = vmul.f32 0.03125, %v1626_v63 }
 0x9a0   : > { %v1639_v2 = vsel %vm377_vm2, %v1634_v0, 0.0 }
 0x9a1   : > { %v1632_v3 = vsub.f32 %v3004_v53, %v1629_v1  ;;  %1640 = vadd.xlane.f32.xlu0 %v1639_v2 }
 0x9a3   : > { %v1635_v4 = vmul.f32 %v1632_v3, %v1632_v3 }
 0x9a5   : > { %v1642_v5 = vsel %vm384_vm3, %v1635_v4, 0.0 }
 0x9a6   : > { %1643 = vadd.xlane.f32.xlu1 %v1642_v5 }
 0xa26   : > { %v1638_v10 = vpop.xlane.xlu0 %1637 }
 0xa27   : > { %v1645_v11 = vmul.f32 0.03125, %v1638_v10 }
 0xa29   : > { %v1648_v13 = vadd.f32 1e-05, %v1645_v11  ;;  %v1793_v11 = vsub.s32 6, %v2686_v39 }
 0xa2a   : > { %v1641_v15 = vpop.xlane.xlu0 %1640 }
 0xa2b   : > { %2485 = vrsqrt.f32 %v1648_v13  ;;  %v1646_v17 = vmul.f32 0.03125, %v1641_v15  ;;  %v1794_v13 = vrot.slane %v3024_v22, %v1793_v11 }
 0xa2d   : > { %v1649_v18 = vadd.f32 1e-05, %v1646_v17 }
 0xa2f   : > { %2487 = vrsqrt.f32 %v1649_v18  ;;  %v1644_v19 = vpop.xlane.xlu1 %1643 }
 0xa30   : > { %v1647_v20 = vmul.f32 0.03125, %v1644_v19 }
 0xa32   : > { %v1650_v21 = vadd.f32 1e-05, %v1647_v20 }
 0xa34   : > { %2489 = vrsqrt.f32 %v1650_v21 }
 0xa38   : > { %v2486_v27 = vpop.eup %2485 }
 0xa39   : > { %v1654_v28 = vmul.f32 %v2486_v27, %v1630_v58 }
 0xa3b   : > { %v1661_v12 = vmul.f32 %v1660_v26, %v1654_v28 }
 0xa3c   : > { %v2488_v30 = vpop.eup %2487 }
 0xa3d   : > { %v1668_v31 = vadd.f32 %v1667_v29, %v1661_v12  ;;  %v1655_v32 = vmul.f32 %v2488_v30, %v1631_v57 }
 0xa3f   : > { %2335 = vmatmul.mubr.msk.f32.vlgmr.msra.gmra.mxu0 %vm377_vm2, %v1668_v31  ;;  %v1662_v14 = vmul.f32 %v1660_v26, %v1655_v32 }
 0xa40   : > { %2337 = vmatprep.mubr.msk.f32.mxu0 %vm2542_vm4, %v2541_v25 }
 0xa41   : > { %v2490_v33 = vpop.eup %2489  ;;  %v1669_v34 = vadd.f32 %v1667_v29, %v1662_v14 }
 0xa42   : > { %v1656_v35 = vmul.f32 %v2490_v33, %v1632_v3 }
 0xa43   : > { %2338 = vmatmul.mubr.msk.f32.gmra.mxu0 %vm377_vm2, %v1669_v34 }
 0xa44   : > { %2340 = vmatprep.mubr.msk.f32.mxu0 %vm2542_vm4, %v2541_v25  ;;  %v1663_v36 = vmul.f32 %v1660_v26, %v1656_v35 }
 0xa46   : > { %v1670_v37 = vadd.f32 %v1667_v29, %v1663_v36 }
 0xa48   : > { %2341 = vmatmul.mubr.msk.f32.gmra.mxu0 %vm377_vm2, %v1670_v37 }
 0xaff   : > { %v1754_v47 = vpop.f32.mrf.mxu0 }
 0xb00   : > { %v1755_v51 = vadd.f32 %v1754_v47, %v1678_v41 }
 0xb01   : > { %v2336_v52 = vpop.f32.mrf.mxu0 }
 0xb02   : > { %v1771_v54 = vmul.f32 0.70710677, %v1755_v51  ;;  %v1768_v0 = vmul.f32 0.5, %v1755_v51 }
 0xb03   : > { %v1759_v55 = vpop.f32.mrf.mxu0 }
 0xb04   : > { %2491 = verf.f32 %v1771_v54  ;;  %v1760_v56 = vadd.f32 %v1759_v55, %v1678_v41 }
 0xb05   : > { %v2339_v58 = vpop.f32.mrf.mxu0 }
 0xb06   : > { %v1772_v60 = vmul.f32 0.70710677, %v1760_v56  ;;  %v1769_v4 = vmul.f32 0.5, %v1760_v56 }
 0xb08   : > { %2493 = verf.f32 %v1772_v60  ;;  %v1764_v62 = vpop.f32.mrf.mxu0 }
 0xb09   : > { %v1765_v59 = vadd.f32 %v1764_v62, %v1678_v41 }
 0xb0a   : > { %v2342_v57 = vpop.f32.mrf.mxu0 }
 0xb0b   : > { %v1773_v61 = vmul.f32 0.70710677, %v1765_v59  ;;  %v1770_v8 = vmul.f32 0.5, %v1765_v59 }
 0xb0d   : > { %2495 = verf.f32 %v1773_v61 }
 0xb11   : > { %v2492_v63 = vpop.eup %2491 }
 0xb12   : > { %v1777_v1 = vadd.f32 1.0, %v2492_v63 }
 0xb14   : > { %v1780_v2 = vmul.f32 %v1777_v1, %v1768_v0 }
 0xb15   : > { %v2494_v3 = vpop.eup %2493 }
 0xb16   : > { %v1778_v5 = vadd.f32 1.0, %v2494_v3  ;;  %2360 = vmatmul.mubr.msk.f32.vlgmr.msra.gmra.mxu1 %vm1795_vm11, %v1780_v2 }
 0xb17   : > { %2362 = vmatprep.mubr.msk.f32.mxu1 %vm2542_vm4, %v2541_v25 }
 0xb18   : > { %v1781_v6 = vmul.f32 %v1778_v5, %v1769_v4 }
 0xb1a   : > { %v2496_v7 = vpop.eup %2495  ;;  %2363 = vmatmul.mubr.msk.f32.gmra.mxu1 %vm1795_vm11, %v1781_v6 }
 0xb1b   : > { %v1779_v9 = vadd.f32 1.0, %v2496_v7  ;;  %2365 = vmatprep.mubr.msk.f32.mxu1 %vm2542_vm4, %v2541_v25 }
 0xb1d   : > { %v1782_v10 = vmul.f32 %v1779_v9, %v1770_v8 }
 0xb1f   : > { %2366 = vmatmul.mubr.msk.f32.gmra.mxu1 %vm1795_vm11, %v1782_v10 }
 0xbd6   : > { %v1871_v15 = vpop.f32.mrf.mxu1 }
 0xbd7   : > { %v1872_v17 = vadd.f32 %v1871_v15, %v1794_v13 }
 0xbd8   : > { %v2361_v18 = vpop.f32.mrf.mxu1 }
 0xbd9   : > { %v1885_v19 = vadd.f32 %v1872_v17, %v2994_v42 }
 0xbda   : > { %v1876_v20 = vpop.f32.mrf.mxu1 }
 0xbdb   : > { %1888 = vst.msk [vmem:[%s2657_s15] sm:$0xff] %vm377_vm2, %v1885_v19  ;;  %v1877_v21 = vadd.f32 %v1876_v20, %v1794_v13 }
 0xbdc   : > { %v2364_v23 = vpop.f32.mrf.mxu1 }
 0xbdd   : > { %v1886_v24 = vadd.f32 %v1877_v21, %v2999_v48 }
 0xbdf   : > { %1889 = vst.msk [vmem:[%s2657_s15 + $0x8] sm:$0xff] %vm377_vm2, %v1886_v24  ;;  %v1881_v25 = vpop.f32.mrf.mxu1 }
 0xbe0   : > { %v1882_v26 = vadd.f32 %v1881_v25, %v1794_v13 }
 0xbe1   : > { %v2367_v39 = vpop.f32.mrf.mxu1 }
 0xbe2   : > { %v1887_v27 = vadd.f32 %v1882_v26, %v3004_v53 }
 0xbe4   : > { %1890 = vst.msk [vmem:[%s2657_s15 + $0x10] sm:$0x1] %vm384_vm3, %v1887_v27 }
 0xbe5 PF: > { %s16_s25 = sadd.s32 1, %s2539_s25   ;;  %s3093_s21 = smov %s2531_s23 }
 0xbe6   : > { %p13_p8 = scmp.ge.s32.totalorder %s16_s25, 6   ;;  %s3094_s22 = smov %s2535_s24 }
 0xbe7   : > { %s3095_s23 = smov %s3098_s26  ;;  %s3096_s24 = smov %s3102_s27 }
 0xbe8   :  { %15 = sbr.rel (!%p13_p8) target bundleno = 4 (0x4), region = 93 }

</bundles_post_ra>
